<compile_context>
chip_gen: v7x
topology: tpu7x:2x2x1
jax: 0.10.0
libtpu: 0.0.40
codegen_flags: <defaults>
</compile_context>

<pallas_src>
import math
from functools import partial

import jax
import jax.numpy as jnp
from jax import lax
from jax.experimental import pallas as pl
from jax.experimental.pallas import tpu as pltpu


# ----------------------------- small helpers ------------------------------- #

def _sigmoid(x):
    return 1.0 / (1.0 + jnp.exp(-x))


def _softplus(x):
    return jnp.maximum(x, 0.0) + jnp.log(1.0 + jnp.exp(-jnp.abs(x)))


def _round_up(x, m):
    return (x + m - 1) // m * m


def _row_tiles(m, cap=256):
    """Pick a sublane-aligned row tile tm and padded row count Mp (tm | Mp)."""
    if m < 128:
        mp = _round_up(m, 16)
        return mp, mp
    mp = _round_up(m, 128)
    tm = cap if mp % cap == 0 else 128
    return tm, mp


def _col_tile(n_padded, prefs):
    for t in prefs:
        if n_padded % t == 0:
            return t
    return n_padded


# --------------------------- tiled linear (MXU) ----------------------------- #

def _matmul_kernel(x_ref, w_ref, o_ref, acc_ref):
    @pl.when(pl.program_id(2) == 0)
    def _():
        acc_ref[...] = jnp.zeros_like(acc_ref)
    acc_ref[...] += jnp.dot(x_ref[...], w_ref[...],
                            preferred_element_type=jnp.float32)

    @pl.when(pl.program_id(2) == pl.num_programs(2) - 1)
    def _():
        o_ref[...] = acc_ref[...]


def _matmul_bias_kernel(x_ref, w_ref, b_ref, o_ref, acc_ref):
    @pl.when(pl.program_id(2) == 0)
    def _():
        acc_ref[...] = jnp.zeros_like(acc_ref)
    acc_ref[...] += jnp.dot(x_ref[...], w_ref[...],
                            preferred_element_type=jnp.float32)

    @pl.when(pl.program_id(2) == pl.num_programs(2) - 1)
    def _():
        o_ref[...] = acc_ref[...] + b_ref[...]


def make_linear(w, b=None):
    """w: (N, K) PyTorch nn.Linear layout -> pre-transposed, padded bf16 (Kp, Np)."""
    N, K = w.shape
    Kp, Np = _round_up(K, 128), _round_up(N, 128)
    wt = jnp.zeros((Kp, Np), jnp.float32).at[:K, :N].set(w.T).astype(jnp.bfloat16)
    bp = None if b is None else jnp.zeros((Np,), jnp.float32).at[:N].set(b)
    return {"w": wt, "b": bp}


def linear(x, lp, n_out):
    """x: (M, K) f32; lp from make_linear; n_out: true output width -> (M, n_out) f32."""
    M, K = x.shape
    w = lp["w"]
    Kp, Np = w.shape
    tm, Mp = _row_tiles(M)
    tn = _col_tile(Np, (256, 128))
    tk = _col_tile(Kp, (512, 256, 128))

    xb = x.astype(jnp.bfloat16)
    if (Mp, Kp) != (M, K):
        xb = jnp.pad(xb, ((0, Mp - M), (0, Kp - K)))

    grid = (Mp // tm, Np // tn, Kp // tk)
    x_spec = pl.BlockSpec((tm, tk), lambda i, j, k: (i, k))
    w_spec = pl.BlockSpec((tk, tn), lambda i, j, k: (k, j))
    o_spec = pl.BlockSpec((tm, tn), lambda i, j, k: (i, j))
    cparams = pltpu.CompilerParams(
        dimension_semantics=("parallel", "parallel", "arbitrary"))
    scratch = [pltpu.VMEM((tm, tn), jnp.float32)]

    if lp["b"] is None:
        out = pl.pallas_call(
            _matmul_kernel,
            out_shape=jax.ShapeDtypeStruct((Mp, Np), jnp.float32),
            grid=grid, in_specs=[x_spec, w_spec], out_specs=o_spec,
            scratch_shapes=scratch, compiler_params=cparams,
        )(xb, w)
    else:
        b_spec = pl.BlockSpec((1, tn), lambda i, j, k: (0, j))
        out = pl.pallas_call(
            _matmul_bias_kernel,
            out_shape=jax.ShapeDtypeStruct((Mp, Np), jnp.float32),
            grid=grid, in_specs=[x_spec, w_spec, b_spec], out_specs=o_spec,
            scratch_shapes=scratch, compiler_params=cparams,
        )(xb, w, lp["b"].reshape(1, Np))
    return out[:M, :n_out]


# ------------------------------ RMSNorm kernels ------------------------------ #

def _rmsnorm_kernel(h_ref, w_ref, y_ref, *, eps):
    x = h_ref[...]
    var = jnp.mean(x * x, axis=-1, keepdims=True)
    y_ref[...] = x * lax.rsqrt(var + eps) * w_ref[...]


def _add_rmsnorm_kernel(h_ref, r_ref, w_ref, y_ref, res_ref, *, eps):
    x = h_ref[...] + r_ref[...]          # fused residual add (residual_in_fp32)
    res_ref[...] = x
    var = jnp.mean(x * x, axis=-1, keepdims=True)
    y_ref[...] = x * lax.rsqrt(var + eps) * w_ref[...]


def rmsnorm(x, w, eps=1e-5):
    M, D = x.shape
    tm, Mp = _row_tiles(M)
    xp = jnp.pad(x, ((0, Mp - M), (0, 0))) if Mp != M else x
    y = pl.pallas_call(
        partial(_rmsnorm_kernel, eps=eps),
        out_shape=jax.ShapeDtypeStruct((Mp, D), jnp.float32),
        grid=(Mp // tm,),
        in_specs=[pl.BlockSpec((tm, D), lambda i: (i, 0)),
                  pl.BlockSpec((1, D), lambda i: (0, 0))],
        out_specs=pl.BlockSpec((tm, D), lambda i: (i, 0)),
        compiler_params=pltpu.CompilerParams(dimension_semantics=("parallel",)),
    )(xp, w.reshape(1, D))
    return y[:M]


def add_rmsnorm(hidden, residual, w, eps=1e-5):
    M, D = hidden.shape
    tm, Mp = _row_tiles(M)
    if Mp != M:
        hidden = jnp.pad(hidden, ((0, Mp - M), (0, 0)))
        residual = jnp.pad(residual, ((0, Mp - M), (0, 0)))
    y, res = pl.pallas_call(
        partial(_add_rmsnorm_kernel, eps=eps),
        out_shape=(jax.ShapeDtypeStruct((Mp, D), jnp.float32),
                   jax.ShapeDtypeStruct((Mp, D), jnp.float32)),
        grid=(Mp // tm,),
        in_specs=[pl.BlockSpec((tm, D), lambda i: (i, 0)),
                  pl.BlockSpec((tm, D), lambda i: (i, 0)),
                  pl.BlockSpec((1, D), lambda i: (0, 0))],
        out_specs=(pl.BlockSpec((tm, D), lambda i: (i, 0)),
                   pl.BlockSpec((tm, D), lambda i: (i, 0))),
        compiler_params=pltpu.CompilerParams(dimension_semantics=("parallel",)),
    )(hidden, residual, w.reshape(1, D))
    return y[:M], res[:M]


# ------------------- depthwise causal conv1d (k taps) + SiLU ----------------- #

def _dwconv_silu_kernel(xp_ref, w_ref, b_ref, o_ref):
    # xp_ref: (L+K-1, d) padded input; w_ref: (K, d); b_ref: (1, d)
    L = o_ref.shape[0]
    K = w_ref.shape[0]
    y = b_ref[...]
    for k in range(K):                       # static unrolled taps
        y = y + xp_ref[pl.ds(k, L), :] * w_ref[pl.ds(k, 1), :]
    o_ref[...] = y * _sigmoid(y)             # SiLU


def causal_dwconv_silu(x, w, b, reverse=False):
    """x: (B, L, d); w: (K, d); b: (d,).  reverse=True implements the flipped-
    sequence causal conv of bimamba's backward direction (anti-causal conv with
    reversed taps) so no (B,L,d) flip copies are materialised."""
    B, L, d = x.shape
    K = w.shape[0]
    if reverse:
        xp = jnp.pad(x, ((0, 0), (0, K - 1), (0, 0)))
        w = jnp.flip(w, axis=0)
    else:
        xp = jnp.pad(x, ((0, 0), (K - 1, 0), (0, 0)))
    return pl.pallas_call(
        _dwconv_silu_kernel,
        out_shape=jax.ShapeDtypeStruct((B, L, d), jnp.float32),
        grid=(B,),
        in_specs=[
            pl.BlockSpec((None, L + K - 1, d), lambda i: (i, 0, 0)),
            pl.BlockSpec((K, d), lambda i: (0, 0)),
            pl.BlockSpec((1, d), lambda i: (0, 0)),
        ],
        out_specs=pl.BlockSpec((None, L, d), lambda i: (i, 0, 0)),
        compiler_params=pltpu.CompilerParams(dimension_semantics=("parallel",)),
    )(xp, w, b.reshape(1, d))


# --------------------- fused x_proj + dt_proj projection --------------------- #

def _xproj_dt_kernel(u_ref, xw_ref, dw_ref, dt_ref, bc_ref, *, dt_rank):
    # u: (tm, d_inner) bf16; xw: (d_inner, r+2s) bf16; dw: (r, d_inner) f32
    xd = jnp.dot(u_ref[...], xw_ref[...], preferred_element_type=jnp.float32)
    dt_ref[...] = jnp.dot(xd[:, :dt_rank], dw_ref[...],
                          preferred_element_type=jnp.float32)
    bc_ref[...] = xd[:, dt_rank:]


def xproj_dtproj(u, xw, dw, d_state):
    """u: (M, d_inner) -> (dt (M, d_inner), bc (M, 2*d_state)); x_dbl stays in VMEM."""
    M, d_inner = u.shape
    r2s = xw.shape[1]
    dt_rank = r2s - 2 * d_state
    tm, Mp = _row_tiles(M)
    ub = u.astype(jnp.bfloat16)
    if Mp != M:
        ub = jnp.pad(ub, ((0, Mp - M), (0, 0)))
    dt, bc = pl.pallas_call(
        partial(_xproj_dt_kernel, dt_rank=dt_rank),
        out_shape=(jax.ShapeDtypeStruct((Mp, d_inner), jnp.float32),
                   jax.ShapeDtypeStruct((Mp, 2 * d_state), jnp.float32)),
        grid=(Mp // tm,),
        in_specs=[pl.BlockSpec((tm, d_inner), lambda i: (i, 0)),
                  pl.BlockSpec((d_inner, r2s), lambda i: (0, 0)),
                  pl.BlockSpec((dt_rank, d_inner), lambda i: (0, 0))],
        out_specs=(pl.BlockSpec((tm, d_inner), lambda i: (i, 0)),
                   pl.BlockSpec((tm, 2 * d_state), lambda i: (i, 0))),
        compiler_params=pltpu.CompilerParams(dimension_semantics=("parallel",)),
    )(ub, xw, dw)
    return dt[:M], bc[:M]


# ------------------------------ selective scan ------------------------------- #

def _ssm_scan_kernel(u_ref, dt_ref, db_ref, At_ref, B_ref, C_ref, D_ref, z_ref,
                     eye_ref, o_ref, h_ref, dts_ref, du_ref, *, reverse):
    # u/dt/z/o: (L, d_inner); B/C: (L, d_state); At: (d_state, d_inner);
    # db/D: (1, d_inner); eye: (d_state, d_state); scratches: h, dts, du.
    L = o_ref.shape[0]

    # Hoisted elementwise passes (vectorized over the whole tile).
    dts = _softplus(dt_ref[...] + db_ref[...])
    dts_ref[...] = dts
    du_ref[...] = dts * u_ref[...]
    h_ref[...] = jnp.zeros_like(h_ref)

    def body(i, carry):
        t = (L - 1 - i) if reverse else i
        dt_t = dts_ref[pl.ds(t, 1), :]                            # (1, d_inner)
        dA = jnp.exp(At_ref[...] * dt_t)                          # (d_state, d_inner)
        B_row = B_ref[pl.ds(t, 1), :]                             # (1, d_state)
        # row -> column via identity mask + lane reduce (XLU slot)
        B_col = jnp.sum(eye_ref[...] * B_row, axis=1, keepdims=True)   # (d_state, 1)
        h = dA * h_ref[...] + B_col * du_ref[pl.ds(t, 1), :]
        h_ref[...] = h
        C_row = C_ref[pl.ds(t, 1), :]                             # (1, d_state)
        o_ref[pl.ds(t, 1), :] = jnp.dot(C_row, h,
                                        preferred_element_type=jnp.float32)
        return carry

    lax.fori_loop(0, L, body, 0)

    # Hoisted D-skip and SiLU(z) gating (single vector pass).
    z = z_ref[...]
    o_ref[...] = (o_ref[...] + u_ref[...] * D_ref[...]) * (z * _sigmoid(z))


def selective_scan(u, dt, dt_bias, A, Bc, Cc, D, z, reverse=False):
    """u/dt/z: (B, L, d_inner); Bc/Cc: (B, L, d_state); A: (d_inner, d_state)."""
    Bsz, L, d_inner = u.shape
    d_state = A.shape[1]
    At = A.T                                  # (d_state, d_inner), glue-side transpose
    eye = jnp.eye(d_state, dtype=jnp.float32)
    return pl.pallas_call(
        partial(_ssm_scan_kernel, reverse=reverse),
        out_shape=jax.ShapeDtypeStruct((Bsz, L, d_inner), jnp.float32),
        grid=(Bsz,),
        in_specs=[
            pl.BlockSpec((None, L, d_inner), lambda i: (i, 0, 0)),   # u
            pl.BlockSpec((None, L, d_inner), lambda i: (i, 0, 0)),   # dt (pre-bias)
            pl.BlockSpec((1, d_inner), lambda i: (0, 0)),            # dt bias
            pl.BlockSpec((d_state, d_inner), lambda i: (0, 0)),      # A^T
            pl.BlockSpec((None, L, d_state), lambda i: (i, 0, 0)),   # B
            pl.BlockSpec((None, L, d_state), lambda i: (i, 0, 0)),   # C
            pl.BlockSpec((1, d_inner), lambda i: (0, 0)),            # D
            pl.BlockSpec((None, L, d_inner), lambda i: (i, 0, 0)),   # z
            pl.BlockSpec((d_state, d_state), lambda i: (0, 0)),      # identity
        ],
        out_specs=pl.BlockSpec((None, L, d_inner), lambda i: (i, 0, 0)),
        scratch_shapes=[pltpu.VMEM((d_state, d_inner), jnp.float32),
                        pltpu.VMEM((L, d_inner), jnp.float32),
                        pltpu.VMEM((L, d_inner), jnp.float32)],
        compiler_params=pltpu.CompilerParams(dimension_semantics=("parallel",)),
    )(u, dt, dt_bias.reshape(1, d_inner), At, Bc, Cc, D.reshape(1, d_inner), z, eye)


# ------------------------------ model (glue) -------------------------------- #

def mamba_mixer(hidden, lp):
    """Bi-directional Mamba mixer (bimamba_type='v2', if_divide_out=False)."""
    B, L, D = hidden.shape
    d_inner = lp["fwd"]["conv_w"].shape[1]
    d_state = lp["fwd"]["A_log"].shape[1]

    xz = linear(hidden.reshape(B * L, D), lp["in_proj"], 2 * d_inner)
    xz = xz.reshape(B, L, 2 * d_inner)
    x, z = xz[..., :d_inner], xz[..., d_inner:]

    def one_direction(prm, reverse):
        u = causal_dwconv_silu(x, prm["conv_w"], prm["conv_b"], reverse=reverse)
        dt, bc = xproj_dtproj(u.reshape(B * L, d_inner),
                              prm["x_proj_w"], prm["dt_w"], d_state)
        Bc = bc[:, :d_state].reshape(B, L, d_state)
        Cc = bc[:, d_state:].reshape(B, L, d_state)
        A = -jnp.exp(prm["A_log"])
        return selective_scan(u, dt.reshape(B, L, d_inner), prm["dt_bias"],
                              A, Bc, Cc, prm["D"], z, reverse=reverse)

    y = one_direction(lp["fwd"], False) + one_direction(lp["bwd"], True)
    return linear(y.reshape(B * L, d_inner), lp["out_proj"], D).reshape(B, L, D)


def videomamba_forward(x_img, params, *, patch, embed_dim, num_classes, eps):
    B, C, H, W = x_img.shape
    nH, nW = H // patch, W // patch

    # Patch embedding (Conv2d stride=patch) as a tiled matmul over flat patches.
    patches = x_img.reshape(B, C, nH, patch, nW, patch).transpose(0, 2, 4, 1, 3, 5)
    patches = patches.reshape(B * nH * nW, C * patch * patch)
    emb = linear(patches, params["patch"], embed_dim).reshape(B, nH * nW, embed_dim)

    cls = jnp.broadcast_to(params["cls_token"], (B, 1, embed_dim))
    x = jnp.concatenate([cls, emb], axis=1) + params["pos_embed"]       # (B, N+1, D)

    Bsz, L, D = x.shape
    hidden = x
    residual = None
    for lp in params["layers"]:
        if residual is None:                      # first block: residual = hidden
            residual = hidden
            h2 = rmsnorm(hidden.reshape(Bsz * L, D), lp["norm_w"], eps)
        else:
            h2, r2 = add_rmsnorm(hidden.reshape(Bsz * L, D),
                                 residual.reshape(Bsz * L, D), lp["norm_w"], eps)
            residual = r2.reshape(Bsz, L, D)
        hidden = mamba_mixer(h2.reshape(Bsz, L, D), lp)

    final, _ = add_rmsnorm(hidden.reshape(Bsz * L, D),
                           residual.reshape(Bsz * L, D), params["norm_f_w"], eps)
    final = final.reshape(Bsz, L, D)

    cls_tok = final[:, 0, :]
    other_tokens = final[:, 1:, :]
    cls_pred = linear(cls_tok, params["head"], num_classes)
    return cls_pred, other_tokens


# ----------------------------- parameter init ------------------------------- #

def init_params(key, *, img, patch, channels, embed_dim, depth, num_classes):
    D = embed_dim
    d_inner, d_state, d_conv = 2 * D, 16, 4
    dt_rank = math.ceil(D / 16)
    num_patches = (img // patch) ** 2

    keys = jax.random.split(key, 3 + depth)

    def nrm(k, shape, std=0.02):
        return std * jax.random.normal(k, shape, jnp.float32)

    def dt_bias_init(k):
        dt = jnp.exp(jax.random.uniform(k, (d_inner,)) *
                     (math.log(0.1) - math.log(1e-3)) + math.log(1e-3))
        dt = jnp.clip(dt, 1e-4, None)
        return dt + jnp.log(-jnp.expm1(-dt))          # inverse softplus

    A_log = jnp.broadcast_to(jnp.log(jnp.arange(1, d_state + 1, dtype=jnp.float32)),
                             (d_inner, d_state))

    def make_dir(k):
        dk = jax.random.split(k, 4)
        return {
            "conv_w": nrm(dk[0], (d_conv, d_inner), std=0.2),
            "conv_b": jnp.zeros((d_inner,), jnp.float32),
            # pre-transposed (d_inner, dt_rank + 2*d_state), bf16
            "x_proj_w": nrm(dk[1], (dt_rank + 2 * d_state, d_inner),
                            std=d_inner ** -0.5).T.astype(jnp.bfloat16),
            # pre-transposed (dt_rank, d_inner), f32
            "dt_w": nrm(dk[2], (d_inner, dt_rank), std=dt_rank ** -0.5).T,
            "dt_bias": dt_bias_init(dk[3]),
            "A_log": A_log,
            "D": jnp.ones((d_inner,), jnp.float32),
        }

    params = {
        "patch": make_linear(nrm(keys[0], (D, channels * patch * patch)),
                             jnp.zeros((D,), jnp.float32)),
        "cls_token": jnp.zeros((1, 1, D), jnp.float32),
        "pos_embed": nrm(keys[1], (1, num_patches + 1, D)),
        "norm_f_w": jnp.ones((D,), jnp.float32),
        "head": make_linear(nrm(keys[2], (num_classes, D)),
                            jnp.zeros((num_classes,), jnp.float32)),
        "layers": [],
    }
    for i in range(depth):
        lk = jax.random.split(keys[3 + i], 4)
        params["layers"].append({
            "norm_w": jnp.ones((D,), jnp.float32),
            "in_proj": make_linear(nrm(lk[0], (2 * d_inner, D), std=D ** -0.5)),
            "out_proj": make_linear(nrm(lk[1], (D, d_inner),
                                        std=(d_inner ** -0.5) / math.sqrt(depth))),
            "fwd": make_dir(lk[2]),
            "bwd": make_dir(lk[3]),
        })
    return params


# ---------------------------------- main ------------------------------------ #

if __name__ == "__main__":
    cfg = dict(img=16, patch=8, channels=3, embed_dim=32, depth=2, num_classes=10)
    key = jax.random.PRNGKey(0)
    kp, kx = jax.random.split(key)

    params = init_params(kp, **cfg)
    x = jax.random.normal(kx, (2, cfg["channels"], cfg["img"], cfg["img"]), jnp.float32)

    fwd = jax.jit(partial(videomamba_forward, patch=cfg["patch"],
                          embed_dim=cfg["embed_dim"],
                          num_classes=cfg["num_classes"], eps=1e-5))
    cls_pred, other_tokens = fwd(x, params)
    jax.block_until_ready((cls_pred, other_tokens))

    num_patches = (cfg["img"] // cfg["patch"]) ** 2
    assert cls_pred.shape == (2, cfg["num_classes"])
    assert other_tokens.shape == (2, num_patches, cfg["embed_dim"])
    assert bool(jnp.all(jnp.isfinite(cls_pred))) and bool(jnp.all(jnp.isfinite(other_tokens)))
    print("KERNEL_OK")
</pallas_src>

<mosaic_0001>
module attributes {stable_mosaic.version = 11 : i64} {
  func.func @_matmul_bias_kernel(%arg0: i32, %arg1: i32, %arg2: i32, %arg3: memref<16x256xbf16, #tpu.memory_space<vmem>>, %arg4: memref<256x128xbf16, #tpu.memory_space<vmem>>, %arg5: memref<1x128xf32, #tpu.memory_space<vmem>>, %arg6: memref<16x128xf32, #tpu.memory_space<vmem>>, %arg7: memref<16x128xf32, #tpu.memory_space<vmem>>) attributes {dimension_semantics = [#tpu.dimension_semantics<parallel>, #tpu.dimension_semantics<parallel>, #tpu.dimension_semantics<arbitrary>], iteration_bounds = array<i64: 1, 1, 1>, scalar_prefetch = 0 : i64, scratch_operands = 1 : i64, tpu.core_type = #tpu.core_type<tc>, window_params = [{transform_indices = @transform_0, window_bounds = array<i64: 16, 256>}, {transform_indices = @transform_1, window_bounds = array<i64: 256, 128>}, {transform_indices = @transform_2, window_bounds = array<i64: 1, 128>}, {transform_indices = @transform_3, window_bounds = array<i64: 16, 128>}]} {
    %c0_i32 = arith.constant 0 : i32
    %0 = arith.cmpi eq, %arg2, %c0_i32 : i32
    %1 = arith.extui %0 : i1 to i32
    %c0_i32_0 = arith.constant 0 : i32
    %2 = arith.cmpi ne, %1, %c0_i32_0 : i32
    scf.if %2 {
      %cst_10 = arith.constant 0.000000e+00 : f32
      %12 = vector.broadcast %cst_10 : f32 to vector<16x128xf32>
      %c0_11 = arith.constant 0 : index
      %c0_12 = arith.constant 0 : index
      %13 = vector.load %arg7[%c0_11, %c0_12] : memref<16x128xf32, #tpu.memory_space<vmem>>, vector<16x128xf32>
      tpu.vector_store %arg7[%c0_11, %c0_12], %12 {strides = array<i32>} : memref<16x128xf32, #tpu.memory_space<vmem>>, vector<16x128xf32>,
    } else {
    }
    %c0 = arith.constant 0 : index
    %c0_1 = arith.constant 0 : index
    %3 = vector.load %arg7[%c0, %c0_1] : memref<16x128xf32, #tpu.memory_space<vmem>>, vector<16x128xf32>
    %c0_2 = arith.constant 0 : index
    %c0_3 = arith.constant 0 : index
    %4 = vector.load %arg3[%c0_2, %c0_3] : memref<16x256xbf16, #tpu.memory_space<vmem>>, vector<16x256xbf16>
    %c0_4 = arith.constant 0 : index
    %c0_5 = arith.constant 0 : index
    %5 = vector.load %arg4[%c0_4, %c0_5] : memref<256x128xbf16, #tpu.memory_space<vmem>>, vector<256x128xbf16>
    %cst = arith.constant dense<0.000000e+00> : vector<16x128xf32>
    %6 = tpu.matmul %4, %5, %cst {dimension_numbers = #tpu.dot_dimension_numbers<[1], [0], [0], [1], [0, 0, 1, 1], [], []>} : vector<16x256xbf16>, vector<256x128xbf16>, vector<16x128xf32> -> vector<16x128xf32>
    %7 = arith.addf %3, %6 : vector<16x128xf32>
    %c0_6 = arith.constant 0 : index
    %c0_7 = arith.constant 0 : index
    %8 = vector.load %arg7[%c0_6, %c0_7] : memref<16x128xf32, #tpu.memory_space<vmem>>, vector<16x128xf32>
    tpu.vector_store %arg7[%c0_6, %c0_7], %7 {strides = array<i32>} : memref<16x128xf32, #tpu.memory_space<vmem>>, vector<16x128xf32>,
    %c0_i32_8 = arith.constant 0 : i32
    %9 = arith.cmpi eq, %arg2, %c0_i32_8 : i32
    %10 = arith.extui %9 : i1 to i32
    %c0_i32_9 = arith.constant 0 : i32
    %11 = arith.cmpi ne, %10, %c0_i32_9 : i32
    scf.if %11 {
      %c0_10 = arith.constant 0 : index
      %c0_11 = arith.constant 0 : index
      %12 = vector.load %arg7[%c0_10, %c0_11] : memref<16x128xf32, #tpu.memory_space<vmem>>, vector<16x128xf32>
      %c0_12 = arith.constant 0 : index
      %c0_13 = arith.constant 0 : index
      %13 = vector.load %arg5[%c0_12, %c0_13] : memref<1x128xf32, #tpu.memory_space<vmem>>, vector<1x128xf32>
      %14 = vector.broadcast %13 : vector<1x128xf32> to vector<16x128xf32>
      %15 = arith.addf %12, %14 : vector<16x128xf32>
      %c0_14 = arith.constant 0 : index
      %c0_15 = arith.constant 0 : index
      %16 = vector.load %arg6[%c0_14, %c0_15] : memref<16x128xf32, #tpu.memory_space<vmem>>, vector<16x128xf32>
      tpu.vector_store %arg6[%c0_14, %c0_15], %15 {strides = array<i32>} : memref<16x128xf32, #tpu.memory_space<vmem>>, vector<16x128xf32>,
    } else {
    }
    return
  }
  func.func @transform_0(%arg0: i32, %arg1: i32, %arg2: i32) -> (i32, i32) {
    %c0_i32 = arith.constant 0 : i32
    return %arg0, %arg2 : i32, i32
  }
  func.func @transform_1(%arg0: i32, %arg1: i32, %arg2: i32) -> (i32, i32) {
    %c0_i32 = arith.constant 0 : i32
    return %arg2, %arg1 : i32, i32
  }
  func.func @transform_2(%arg0: i32, %arg1: i32, %arg2: i32) -> (i32, i32) {
    %c0_i32 = arith.constant 0 : i32
    %c0_i32_0 = arith.constant 0 : i32
    return %c0_i32, %arg1 : i32, i32
  }
  func.func @transform_3(%arg0: i32, %arg1: i32, %arg2: i32) -> (i32, i32) {
    %c0_i32 = arith.constant 0 : i32
    return %arg0, %arg1 : i32, i32
  }
}

module attributes {stable_mosaic.version = 11 : i64} {
  func.func @_rmsnorm_kernel(%arg0: i32, %arg1: memref<16x32xf32, #tpu.memory_space<vmem>>, %arg2: memref<1x32xf32, #tpu.memory_space<vmem>>, %arg3: memref<16x32xf32, #tpu.memory_space<vmem>>) attributes {dimension_semantics = [#tpu.dimension_semantics<parallel>], iteration_bounds = array<i64: 1>, scalar_prefetch = 0 : i64, scratch_operands = 0 : i64, tpu.core_type = #tpu.core_type<tc>, window_params = [{transform_indices = @transform_0, window_bounds = array<i64: 16, 32>}, {pipeline_mode = #tpu.pipeline_mode<synchronous>, transform_indices = @transform_1, window_bounds = array<i64: 1, 32>}, {transform_indices = @transform_2, window_bounds = array<i64: 16, 32>}]} {
    %c0 = arith.constant 0 : index
    %c0_0 = arith.constant 0 : index
    %0 = vector.load %arg1[%c0, %c0_0] : memref<16x32xf32, #tpu.memory_space<vmem>>, vector<16x32xf32>
    %1 = arith.mulf %0, %0 : vector<16x32xf32>
    %cst = arith.constant dense<0.000000e+00> : vector<16xf32>
    %2 = vector.multi_reduction <add>, %1, %cst [1] : vector<16x32xf32> to vector<16xf32>
    %3 = vector.shape_cast %2 : vector<16xf32> to vector<16x1xf32>
    %cst_1 = arith.constant 3.200000e+01 : f32
    %4 = vector.broadcast %cst_1 : f32 to vector<16x1xf32>
    %5 = arith.divf %3, %4 : vector<16x1xf32>
    %cst_2 = arith.constant 9.99999974E-6 : f32
    %6 = vector.broadcast %cst_2 : f32 to vector<16x1xf32>
    %7 = arith.addf %5, %6 : vector<16x1xf32>
    %8 = math.rsqrt %7 : vector<16x1xf32>
    %9 = vector.broadcast %8 : vector<16x1xf32> to vector<16x32xf32>
    %10 = arith.mulf %0, %9 : vector<16x32xf32>
    %c0_3 = arith.constant 0 : index
    %c0_4 = arith.constant 0 : index
    %11 = vector.load %arg2[%c0_3, %c0_4] : memref<1x32xf32, #tpu.memory_space<vmem>>, vector<1x32xf32>
    %12 = vector.broadcast %11 : vector<1x32xf32> to vector<16x32xf32>
    %13 = arith.mulf %10, %12 : vector<16x32xf32>
    %c0_5 = arith.constant 0 : index
    %c0_6 = arith.constant 0 : index
    %14 = vector.load %arg3[%c0_5, %c0_6] : memref<16x32xf32, #tpu.memory_space<vmem>>, vector<16x32xf32>
    tpu.vector_store %arg3[%c0_5, %c0_6], %13 {strides = array<i32>} : memref<16x32xf32, #tpu.memory_space<vmem>>, vector<16x32xf32>,
    return
  }
  func.func @transform_0(%arg0: i32) -> (i32, i32) {
    %c0_i32 = arith.constant 0 : i32
    %c0_i32_0 = arith.constant 0 : i32
    return %arg0, %c0_i32 : i32, i32
  }
  func.func @transform_1(%arg0: i32) -> (i32, i32) {
    %c0_i32 = arith.constant 0 : i32
    %c0_i32_0 = arith.constant 0 : i32
    %c0_i32_1 = arith.constant 0 : i32
    return %c0_i32, %c0_i32_0 : i32, i32
  }
  func.func @transform_2(%arg0: i32) -> (i32, i32) {
    %c0_i32 = arith.constant 0 : i32
    %c0_i32_0 = arith.constant 0 : i32
    return %arg0, %c0_i32 : i32, i32
  }
}

module attributes {stable_mosaic.version = 11 : i64} {
  func.func @_matmul_kernel(%arg0: i32, %arg1: i32, %arg2: i32, %arg3: memref<16x128xbf16, #tpu.memory_space<vmem>>, %arg4: memref<128x128xbf16, #tpu.memory_space<vmem>>, %arg5: memref<16x128xf32, #tpu.memory_space<vmem>>, %arg6: memref<16x128xf32, #tpu.memory_space<vmem>>) attributes {dimension_semantics = [#tpu.dimension_semantics<parallel>, #tpu.dimension_semantics<parallel>, #tpu.dimension_semantics<arbitrary>], iteration_bounds = array<i64: 1, 1, 1>, scalar_prefetch = 0 : i64, scratch_operands = 1 : i64, tpu.core_type = #tpu.core_type<tc>, window_params = [{transform_indices = @transform_0, window_bounds = array<i64: 16, 128>}, {transform_indices = @transform_1, window_bounds = array<i64: 128, 128>}, {transform_indices = @transform_2, window_bounds = array<i64: 16, 128>}]} {
    %c0_i32 = arith.constant 0 : i32
    %0 = arith.cmpi eq, %arg2, %c0_i32 : i32
    %1 = arith.extui %0 : i1 to i32
    %c0_i32_0 = arith.constant 0 : i32
    %2 = arith.cmpi ne, %1, %c0_i32_0 : i32
    scf.if %2 {
      %cst_10 = arith.constant 0.000000e+00 : f32
      %12 = vector.broadcast %cst_10 : f32 to vector<16x128xf32>
      %c0_11 = arith.constant 0 : index
      %c0_12 = arith.constant 0 : index
      %13 = vector.load %arg6[%c0_11, %c0_12] : memref<16x128xf32, #tpu.memory_space<vmem>>, vector<16x128xf32>
      tpu.vector_store %arg6[%c0_11, %c0_12], %12 {strides = array<i32>} : memref<16x128xf32, #tpu.memory_space<vmem>>, vector<16x128xf32>,
    } else {
    }
    %c0 = arith.constant 0 : index
    %c0_1 = arith.constant 0 : index
    %3 = vector.load %arg6[%c0, %c0_1] : memref<16x128xf32, #tpu.memory_space<vmem>>, vector<16x128xf32>
    %c0_2 = arith.constant 0 : index
    %c0_3 = arith.constant 0 : index
    %4 = vector.load %arg3[%c0_2, %c0_3] : memref<16x128xbf16, #tpu.memory_space<vmem>>, vector<16x128xbf16>
    %c0_4 = arith.constant 0 : index
    %c0_5 = arith.constant 0 : index
    %5 = vector.load %arg4[%c0_4, %c0_5] : memref<128x128xbf16, #tpu.memory_space<vmem>>, vector<128x128xbf16>
    %cst = arith.constant dense<0.000000e+00> : vector<16x128xf32>
    %6 = tpu.matmul %4, %5, %cst {dimension_numbers = #tpu.dot_dimension_numbers<[1], [0], [0], [1], [0, 0, 1, 1], [], []>} : vector<16x128xbf16>, vector<128x128xbf16>, vector<16x128xf32> -> vector<16x128xf32>
    %7 = arith.addf %3, %6 : vector<16x128xf32>
    %c0_6 = arith.constant 0 : index
    %c0_7 = arith.constant 0 : index
    %8 = vector.load %arg6[%c0_6, %c0_7] : memref<16x128xf32, #tpu.memory_space<vmem>>, vector<16x128xf32>
    tpu.vector_store %arg6[%c0_6, %c0_7], %7 {strides = array<i32>} : memref<16x128xf32, #tpu.memory_space<vmem>>, vector<16x128xf32>,
    %c0_i32_8 = arith.constant 0 : i32
    %9 = arith.cmpi eq, %arg2, %c0_i32_8 : i32
    %10 = arith.extui %9 : i1 to i32
    %c0_i32_9 = arith.constant 0 : i32
    %11 = arith.cmpi ne, %10, %c0_i32_9 : i32
    scf.if %11 {
      %c0_10 = arith.constant 0 : index
      %c0_11 = arith.constant 0 : index
      %12 = vector.load %arg6[%c0_10, %c0_11] : memref<16x128xf32, #tpu.memory_space<vmem>>, vector<16x128xf32>
      %c0_12 = arith.constant 0 : index
      %c0_13 = arith.constant 0 : index
      %13 = vector.load %arg5[%c0_12, %c0_13] : memref<16x128xf32, #tpu.memory_space<vmem>>, vector<16x128xf32>
      tpu.vector_store %arg5[%c0_12, %c0_13], %12 {strides = array<i32>} : memref<16x128xf32, #tpu.memory_space<vmem>>, vector<16x128xf32>,
    } else {
    }
    return
  }
  func.func @transform_0(%arg0: i32, %arg1: i32, %arg2: i32) -> (i32, i32) {
    %c0_i32 = arith.constant 0 : i32
    return %arg0, %arg2 : i32, i32
  }
  func.func @transform_1(%arg0: i32, %arg1: i32, %arg2: i32) -> (i32, i32) {
    %c0_i32 = arith.constant 0 : i32
    return %arg2, %arg1 : i32, i32
  }
  func.func @transform_2(%arg0: i32, %arg1: i32, %arg2: i32) -> (i32, i32) {
    %c0_i32 = arith.constant 0 : i32
    return %arg0, %arg1 : i32, i32
  }
}

module attributes {stable_mosaic.version = 11 : i64} {
  func.func @_dwconv_silu_kernel(%arg0: i32, %arg1: memref<1x8x64xf32, #tpu.memory_space<vmem>>, %arg2: memref<4x64xf32, #tpu.memory_space<vmem>>, %arg3: memref<1x64xf32, #tpu.memory_space<vmem>>, %arg4: memref<1x5x64xf32, #tpu.memory_space<vmem>>) attributes {dimension_semantics = [#tpu.dimension_semantics<parallel>], iteration_bounds = array<i64: 2>, scalar_prefetch = 0 : i64, scratch_operands = 0 : i64, tpu.core_type = #tpu.core_type<tc>, window_params = [{transform_indices = @transform_0, window_bounds = array<i64: 1, 8, 64>}, {pipeline_mode = #tpu.pipeline_mode<synchronous>, transform_indices = @transform_1, window_bounds = array<i64: 4, 64>}, {pipeline_mode = #tpu.pipeline_mode<synchronous>, transform_indices = @transform_2, window_bounds = array<i64: 1, 64>}, {transform_indices = @transform_3, window_bounds = array<i64: 1, 5, 64>}]} {
    %c0 = arith.constant 0 : index
    %c0_0 = arith.constant 0 : index
    %0 = vector.load %arg3[%c0, %c0_0] : memref<1x64xf32, #tpu.memory_space<vmem>>, vector<1x64xf32>
    %c0_1 = arith.constant 0 : index
    %c0_2 = arith.constant 0 : index
    %c0_3 = arith.constant 0 : index
    %1 = vector.load %arg1[%c0_1, %c0_2, %c0_3] : memref<1x8x64xf32, #tpu.memory_space<vmem>>, vector<1x5x64xf32>
    %2 = vector.shape_cast %1 : vector<1x5x64xf32> to vector<5x64xf32>
    %c0_4 = arith.constant 0 : index
    %c0_5 = arith.constant 0 : index
    %3 = vector.load %arg2[%c0_4, %c0_5] : memref<4x64xf32, #tpu.memory_space<vmem>>, vector<1x64xf32>
    %4 = vector.broadcast %3 : vector<1x64xf32> to vector<5x64xf32>
    %5 = arith.mulf %2, %4 : vector<5x64xf32>
    %6 = vector.broadcast %0 : vector<1x64xf32> to vector<5x64xf32>
    %7 = arith.addf %6, %5 : vector<5x64xf32>
    %c0_6 = arith.constant 0 : index
    %c1 = arith.constant 1 : index
    %c0_7 = arith.constant 0 : index
    %8 = vector.load %arg1[%c0_6, %c1, %c0_7] : memref<1x8x64xf32, #tpu.memory_space<vmem>>, vector<1x5x64xf32>
    %9 = vector.shape_cast %8 : vector<1x5x64xf32> to vector<5x64xf32>
    %c1_8 = arith.constant 1 : index
    %c0_9 = arith.constant 0 : index
    %10 = vector.load %arg2[%c1_8, %c0_9] : memref<4x64xf32, #tpu.memory_space<vmem>>, vector<1x64xf32>
    %11 = vector.broadcast %10 : vector<1x64xf32> to vector<5x64xf32>
    %12 = arith.mulf %9, %11 : vector<5x64xf32>
    %13 = arith.addf %7, %12 : vector<5x64xf32>
    %c0_10 = arith.constant 0 : index
    %c2 = arith.constant 2 : index
    %c0_11 = arith.constant 0 : index
    %14 = vector.load %arg1[%c0_10, %c2, %c0_11] : memref<1x8x64xf32, #tpu.memory_space<vmem>>, vector<1x5x64xf32>
    %15 = vector.shape_cast %14 : vector<1x5x64xf32> to vector<5x64xf32>
    %c2_12 = arith.constant 2 : index
    %c0_13 = arith.constant 0 : index
    %16 = vector.load %arg2[%c2_12, %c0_13] : memref<4x64xf32, #tpu.memory_space<vmem>>, vector<1x64xf32>
    %17 = vector.broadcast %16 : vector<1x64xf32> to vector<5x64xf32>
    %18 = arith.mulf %15, %17 : vector<5x64xf32>
    %19 = arith.addf %13, %18 : vector<5x64xf32>
    %c0_14 = arith.constant 0 : index
    %c3 = arith.constant 3 : index
    %c0_15 = arith.constant 0 : index
    %20 = vector.load %arg1[%c0_14, %c3, %c0_15] : memref<1x8x64xf32, #tpu.memory_space<vmem>>, vector<1x5x64xf32>
    %21 = vector.shape_cast %20 : vector<1x5x64xf32> to vector<5x64xf32>
    %c3_16 = arith.constant 3 : index
    %c0_17 = arith.constant 0 : index
    %22 = vector.load %arg2[%c3_16, %c0_17] : memref<4x64xf32, #tpu.memory_space<vmem>>, vector<1x64xf32>
    %23 = vector.broadcast %22 : vector<1x64xf32> to vector<5x64xf32>
    %24 = arith.mulf %21, %23 : vector<5x64xf32>
    %25 = arith.addf %19, %24 : vector<5x64xf32>
    %cst = arith.constant 0.000000e+00 : f32
    %26 = vector.broadcast %cst : f32 to vector<5x64xf32>
    %27 = arith.subf %26, %25 : vector<5x64xf32>
    %28 = math.exp %27 : vector<5x64xf32>
    %cst_18 = arith.constant 1.000000e+00 : f32
    %29 = vector.broadcast %cst_18 : f32 to vector<5x64xf32>
    %30 = arith.addf %29, %28 : vector<5x64xf32>
    %cst_19 = arith.constant 1.000000e+00 : f32
    %31 = vector.broadcast %cst_19 : f32 to vector<5x64xf32>
    %32 = arith.divf %31, %30 : vector<5x64xf32>
    %33 = arith.mulf %25, %32 : vector<5x64xf32>
    %c0_20 = arith.constant 0 : index
    %c0_21 = arith.constant 0 : index
    %c0_22 = arith.constant 0 : index
    %34 = vector.load %arg4[%c0_20, %c0_21, %c0_22] : memref<1x5x64xf32, #tpu.memory_space<vmem>>, vector<1x5x64xf32>
    %35 = vector.shape_cast %34 : vector<1x5x64xf32> to vector<5x64xf32>
    %36 = vector.shape_cast %33 : vector<5x64xf32> to vector<1x5x64xf32>
    tpu.vector_store %arg4[%c0_20, %c0_21, %c0_22], %36 {strides = array<i32>} : memref<1x5x64xf32, #tpu.memory_space<vmem>>, vector<1x5x64xf32>,
    return
  }
  func.func @transform_0(%arg0: i32) -> (i32, i32, i32) {
    %c0_i32 = arith.constant 0 : i32
    %c0_i32_0 = arith.constant 0 : i32
    %c0_i32_1 = arith.constant 0 : i32
    return %arg0, %c0_i32, %c0_i32_0 : i32, i32, i32
  }
  func.func @transform_1(%arg0: i32) -> (i32, i32) {
    %c0_i32 = arith.constant 0 : i32
    %c0_i32_0 = arith.constant 0 : i32
    %c0_i32_1 = arith.constant 0 : i32
    return %c0_i32, %c0_i32_0 : i32, i32
  }
  func.func @transform_2(%arg0: i32) -> (i32, i32) {
    %c0_i32 = arith.constant 0 : i32
    %c0_i32_0 = arith.constant 0 : i32
    %c0_i32_1 = arith.constant 0 : i32
    return %c0_i32, %c0_i32_0 : i32, i32
  }
  func.func @transform_3(%arg0: i32) -> (i32, i32, i32) {
    %c0_i32 = arith.constant 0 : i32
    %c0_i32_0 = arith.constant 0 : i32
    %c0_i32_1 = arith.constant 0 : i32
    return %arg0, %c0_i32, %c0_i32_0 : i32, i32, i32
  }
}

module attributes {stable_mosaic.version = 11 : i64} {
  func.func @_xproj_dt_kernel(%arg0: i32, %arg1: memref<16x64xbf16, #tpu.memory_space<vmem>>, %arg2: memref<64x34xbf16, #tpu.memory_space<vmem>>, %arg3: memref<2x64xf32, #tpu.memory_space<vmem>>, %arg4: memref<16x64xf32, #tpu.memory_space<vmem>>, %arg5: memref<16x32xf32, #tpu.memory_space<vmem>>) attributes {dimension_semantics = [#tpu.dimension_semantics<parallel>], iteration_bounds = array<i64: 1>, scalar_prefetch = 0 : i64, scratch_operands = 0 : i64, tpu.core_type = #tpu.core_type<tc>, window_params = [{transform_indices = @transform_0, window_bounds = array<i64: 16, 64>}, {pipeline_mode = #tpu.pipeline_mode<synchronous>, transform_indices = @transform_1, window_bounds = array<i64: 64, 34>}, {pipeline_mode = #tpu.pipeline_mode<synchronous>, transform_indices = @transform_2, window_bounds = array<i64: 2, 64>}, {transform_indices = @transform_3, window_bounds = array<i64: 16, 64>}, {transform_indices = @transform_4, window_bounds = array<i64: 16, 32>}]} {
    %c0 = arith.constant 0 : index
    %c0_0 = arith.constant 0 : index
    %0 = vector.load %arg1[%c0, %c0_0] : memref<16x64xbf16, #tpu.memory_space<vmem>>, vector<16x64xbf16>
    %c0_1 = arith.constant 0 : index
    %c0_2 = arith.constant 0 : index
    %1 = vector.load %arg2[%c0_1, %c0_2] : memref<64x34xbf16, #tpu.memory_space<vmem>>, vector<64x34xbf16>
    %cst = arith.constant dense<0.000000e+00> : vector<16x34xf32>
    %2 = tpu.matmul %0, %1, %cst {dimension_numbers = #tpu.dot_dimension_numbers<[1], [0], [0], [1], [0, 0, 1, 1], [], []>} : vector<16x64xbf16>, vector<64x34xbf16>, vector<16x34xf32> -> vector<16x34xf32>
    %3 = vector.extract_strided_slice %2 {offsets = [0, 0], sizes = [16, 2], strides = [1, 1]} : vector<16x34xf32> to vector<16x2xf32>
    %c0_3 = arith.constant 0 : index
    %c0_4 = arith.constant 0 : index
    %4 = vector.load %arg3[%c0_3, %c0_4] : memref<2x64xf32, #tpu.memory_space<vmem>>, vector<2x64xf32>
    %cst_5 = arith.constant dense<0.000000e+00> : vector<16x64xf32>
    %5 = tpu.matmul %3, %4, %cst_5 {dimension_numbers = #tpu.dot_dimension_numbers<[1], [0], [0], [1], [0, 0, 1, 1], [], []>} : vector<16x2xf32>, vector<2x64xf32>, vector<16x64xf32> -> vector<16x64xf32>
    %c0_6 = arith.constant 0 : index
    %c0_7 = arith.constant 0 : index
    %6 = vector.load %arg4[%c0_6, %c0_7] : memref<16x64xf32, #tpu.memory_space<vmem>>, vector<16x64xf32>
    tpu.vector_store %arg4[%c0_6, %c0_7], %5 {strides = array<i32>} : memref<16x64xf32, #tpu.memory_space<vmem>>, vector<16x64xf32>,
    %7 = vector.extract_strided_slice %2 {offsets = [0, 2], sizes = [16, 32], strides = [1, 1]} : vector<16x34xf32> to vector<16x32xf32>
    %c0_8 = arith.constant 0 : index
    %c0_9 = arith.constant 0 : index
    %8 = vector.load %arg5[%c0_8, %c0_9] : memref<16x32xf32, #tpu.memory_space<vmem>>, vector<16x32xf32>
    tpu.vector_store %arg5[%c0_8, %c0_9], %7 {strides = array<i32>} : memref<16x32xf32, #tpu.memory_space<vmem>>, vector<16x32xf32>,
    return
  }
  func.func @transform_0(%arg0: i32) -> (i32, i32) {
    %c0_i32 = arith.constant 0 : i32
    %c0_i32_0 = arith.constant 0 : i32
    return %arg0, %c0_i32 : i32, i32
  }
  func.func @transform_1(%arg0: i32) -> (i32, i32) {
    %c0_i32 = arith.constant 0 : i32
    %c0_i32_0 = arith.constant 0 : i32
    %c0_i32_1 = arith.constant 0 : i32
    return %c0_i32, %c0_i32_0 : i32, i32
  }
  func.func @transform_2(%arg0: i32) -> (i32, i32) {
    %c0_i32 = arith.constant 0 : i32
    %c0_i32_0 = arith.constant 0 : i32
    %c0_i32_1 = arith.constant 0 : i32
    return %c0_i32, %c0_i32_0 : i32, i32
  }
  func.func @transform_3(%arg0: i32) -> (i32, i32) {
    %c0_i32 = arith.constant 0 : i32
    %c0_i32_0 = arith.constant 0 : i32
    return %arg0, %c0_i32 : i32, i32
  }
  func.func @transform_4(%arg0: i32) -> (i32, i32) {
    %c0_i32 = arith.constant 0 : i32
    %c0_i32_0 = arith.constant 0 : i32
    return %arg0, %c0_i32 : i32, i32
  }
}

module attributes {stable_mosaic.version = 11 : i64} {
  func.func @_ssm_scan_kernel(%arg0: i32, %arg1: memref<1x5x64xf32, #tpu.memory_space<vmem>>, %arg2: memref<1x5x64xf32, #tpu.memory_space<vmem>>, %arg3: memref<1x64xf32, #tpu.memory_space<vmem>>, %arg4: memref<16x64xf32, #tpu.memory_space<vmem>>, %arg5: memref<1x5x16xf32, #tpu.memory_space<vmem>>, %arg6: memref<1x5x16xf32, #tpu.memory_space<vmem>>, %arg7: memref<1x64xf32, #tpu.memory_space<vmem>>, %arg8: memref<1x5x64xf32, #tpu.memory_space<vmem>>, %arg9: memref<16x16xf32, #tpu.memory_space<vmem>>, %arg10: memref<1x5x64xf32, #tpu.memory_space<vmem>>, %arg11: memref<16x64xf32, #tpu.memory_space<vmem>>, %arg12: memref<5x64xf32, #tpu.memory_space<vmem>>, %arg13: memref<5x64xf32, #tpu.memory_space<vmem>>) attributes {dimension_semantics = [#tpu.dimension_semantics<parallel>], iteration_bounds = array<i64: 2>, scalar_prefetch = 0 : i64, scratch_operands = 3 : i64, tpu.core_type = #tpu.core_type<tc>, window_params = [{transform_indices = @transform_0, window_bounds = array<i64: 1, 5, 64>}, {transform_indices = @transform_1, window_bounds = array<i64: 1, 5, 64>}, {pipeline_mode = #tpu.pipeline_mode<synchronous>, transform_indices = @transform_2, window_bounds = array<i64: 1, 64>}, {pipeline_mode = #tpu.pipeline_mode<synchronous>, transform_indices = @transform_3, window_bounds = array<i64: 16, 64>}, {transform_indices = @transform_4, window_bounds = array<i64: 1, 5, 16>}, {transform_indices = @transform_5, window_bounds = array<i64: 1, 5, 16>}, {pipeline_mode = #tpu.pipeline_mode<synchronous>, transform_indices = @transform_6, window_bounds = array<i64: 1, 64>}, {transform_indices = @transform_7, window_bounds = array<i64: 1, 5, 64>}, {pipeline_mode = #tpu.pipeline_mode<synchronous>, transform_indices = @transform_8, window_bounds = array<i64: 16, 16>}, {transform_indices = @transform_9, window_bounds = array<i64: 1, 5, 64>}]} {
    %c0 = arith.constant 0 : index
    %c0_0 = arith.constant 0 : index
    %c0_1 = arith.constant 0 : index
    %0 = vector.load %arg2[%c0, %c0_0, %c0_1] : memref<1x5x64xf32, #tpu.memory_space<vmem>>, vector<1x5x64xf32>
    %1 = vector.shape_cast %0 : vector<1x5x64xf32> to vector<5x64xf32>
    %c0_2 = arith.constant 0 : index
    %c0_3 = arith.constant 0 : index
    %2 = vector.load %arg3[%c0_2, %c0_3] : memref<1x64xf32, #tpu.memory_space<vmem>>, vector<1x64xf32>
    %3 = vector.broadcast %2 : vector<1x64xf32> to vector<5x64xf32>
    %4 = arith.addf %1, %3 : vector<5x64xf32>
    %cst = arith.constant 0.000000e+00 : f32
    %5 = vector.broadcast %cst : f32 to vector<5x64xf32>
    %6 = arith.maximumf %4, %5 : vector<5x64xf32>
    %7 = math.absf %4 : vector<5x64xf32>
    %cst_4 = arith.constant 0.000000e+00 : f32
    %8 = vector.broadcast %cst_4 : f32 to vector<5x64xf32>
    %9 = arith.subf %8, %7 : vector<5x64xf32>
    %10 = math.exp %9 : vector<5x64xf32>
    %cst_5 = arith.constant 1.000000e+00 : f32
    %11 = vector.broadcast %cst_5 : f32 to vector<5x64xf32>
    %12 = arith.addf %11, %10 : vector<5x64xf32>
    %13 = math.log %12 : vector<5x64xf32>
    %14 = arith.addf %6, %13 : vector<5x64xf32>
    %c0_6 = arith.constant 0 : index
    %c0_7 = arith.constant 0 : index
    %15 = vector.load %arg12[%c0_6, %c0_7] : memref<5x64xf32, #tpu.memory_space<vmem>>, vector<5x64xf32>
    tpu.vector_store %arg12[%c0_6, %c0_7], %14 {strides = array<i32>} : memref<5x64xf32, #tpu.memory_space<vmem>>, vector<5x64xf32>,
    %c0_8 = arith.constant 0 : index
    %c0_9 = arith.constant 0 : index
    %c0_10 = arith.constant 0 : index
    %16 = vector.load %arg1[%c0_8, %c0_9, %c0_10] : memref<1x5x64xf32, #tpu.memory_space<vmem>>, vector<1x5x64xf32>
    %17 = vector.shape_cast %16 : vector<1x5x64xf32> to vector<5x64xf32>
    %18 = arith.mulf %14, %17 : vector<5x64xf32>
    %c0_11 = arith.constant 0 : index
    %c0_12 = arith.constant 0 : index
    %19 = vector.load %arg13[%c0_11, %c0_12] : memref<5x64xf32, #tpu.memory_space<vmem>>, vector<5x64xf32>
    tpu.vector_store %arg13[%c0_11, %c0_12], %18 {strides = array<i32>} : memref<5x64xf32, #tpu.memory_space<vmem>>, vector<5x64xf32>,
    %cst_13 = arith.constant 0.000000e+00 : f32
    %20 = vector.broadcast %cst_13 : f32 to vector<16x64xf32>
    %c0_14 = arith.constant 0 : index
    %c0_15 = arith.constant 0 : index
    %21 = vector.load %arg11[%c0_14, %c0_15] : memref<16x64xf32, #tpu.memory_space<vmem>>, vector<16x64xf32>
    tpu.vector_store %arg11[%c0_14, %c0_15], %20 {strides = array<i32>} : memref<16x64xf32, #tpu.memory_space<vmem>>, vector<16x64xf32>,
    %c0_i32 = arith.constant 0 : i32
    %c5_i32 = arith.constant 5 : i32
    %22 = arith.addi %c0_i32, %c5_i32 : i32
    %c1_i32 = arith.constant 1 : i32
    scf.for %arg14 = %c0_i32 to %22 step %c1_i32  : i32 {
      %c4_i32 = arith.constant 4 : i32
      %45 = arith.subi %c4_i32, %arg14 : i32
      %46 = arith.index_cast %45 : i32 to index
      %c0_34 = arith.constant 0 : index
      %47 = vector.load %arg12[%46, %c0_34] : memref<5x64xf32, #tpu.memory_space<vmem>>, vector<1x64xf32>
      %c0_35 = arith.constant 0 : index
      %c0_36 = arith.constant 0 : index
      %48 = vector.load %arg4[%c0_35, %c0_36] : memref<16x64xf32, #tpu.memory_space<vmem>>, vector<16x64xf32>
      %49 = vector.broadcast %47 : vector<1x64xf32> to vector<16x64xf32>
      %50 = arith.mulf %48, %49 : vector<16x64xf32>
      %51 = math.exp %50 : vector<16x64xf32>
      %c0_37 = arith.constant 0 : index
      %52 = arith.index_cast %45 : i32 to index
      %c0_38 = arith.constant 0 : index
      %53 = vector.load %arg5[%c0_37, %52, %c0_38] : memref<1x5x16xf32, #tpu.memory_space<vmem>>, vector<1x1x16xf32>
      %54 = vector.shape_cast %53 : vector<1x1x16xf32> to vector<1x16xf32>
      %c0_39 = arith.constant 0 : index
      %c0_40 = arith.constant 0 : index
      %55 = vector.load %arg9[%c0_39, %c0_40] : memref<16x16xf32, #tpu.memory_space<vmem>>, vector<16x16xf32>
      %56 = vector.broadcast %54 : vector<1x16xf32> to vector<16x16xf32>
      %57 = arith.mulf %55, %56 : vector<16x16xf32>
      %cst_41 = arith.constant dense<0.000000e+00> : vector<16xf32>
      %58 = vector.multi_reduction <add>, %57, %cst_41 [1] : vector<16x16xf32> to vector<16xf32>
      %59 = vector.shape_cast %58 : vector<16xf32> to vector<16x1xf32>
      %c0_42 = arith.constant 0 : index
      %c0_43 = arith.constant 0 : index
      %60 = vector.load %arg11[%c0_42, %c0_43] : memref<16x64xf32, #tpu.memory_space<vmem>>, vector<16x64xf32>
      %61 = arith.mulf %51, %60 : vector<16x64xf32>
      %62 = arith.index_cast %45 : i32 to index
      %c0_44 = arith.constant 0 : index
      %63 = vector.load %arg13[%62, %c0_44] : memref<5x64xf32, #tpu.memory_space<vmem>>, vector<1x64xf32>
      %64 = vector.broadcast %59 : vector<16x1xf32> to vector<16x64xf32>
      %65 = vector.broadcast %63 : vector<1x64xf32> to vector<16x64xf32>
      %66 = arith.mulf %64, %65 : vector<16x64xf32>
      %67 = arith.addf %61, %66 : vector<16x64xf32>
      %c0_45 = arith.constant 0 : index
      %c0_46 = arith.constant 0 : index
      %68 = vector.load %arg11[%c0_45, %c0_46] : memref<16x64xf32, #tpu.memory_space<vmem>>, vector<16x64xf32>
      tpu.vector_store %arg11[%c0_45, %c0_46], %67 {strides = array<i32>} : memref<16x64xf32, #tpu.memory_space<vmem>>, vector<16x64xf32>,
      %c0_47 = arith.constant 0 : index
      %69 = arith.index_cast %45 : i32 to index
      %c0_48 = arith.constant 0 : index
      %70 = vector.load %arg6[%c0_47, %69, %c0_48] : memref<1x5x16xf32, #tpu.memory_space<vmem>>, vector<1x1x16xf32>
      %71 = vector.shape_cast %70 : vector<1x1x16xf32> to vector<1x16xf32>
      %cst_49 = arith.constant dense<0.000000e+00> : vector<1x64xf32>
      %72 = tpu.matmul %71, %67, %cst_49 {dimension_numbers = #tpu.dot_dimension_numbers<[1], [0], [0], [1], [0, 0, 1, 1], [], []>} : vector<1x16xf32>, vector<16x64xf32>, vector<1x64xf32> -> vector<1x64xf32>
      %c0_50 = arith.constant 0 : index
      %73 = arith.index_cast %45 : i32 to index
      %c0_51 = arith.constant 0 : index
      %74 = vector.load %arg10[%c0_50, %73, %c0_51] : memref<1x5x64xf32, #tpu.memory_space<vmem>>, vector<1x1x64xf32>
      %75 = vector.shape_cast %74 : vector<1x1x64xf32> to vector<1x64xf32>
      %76 = vector.shape_cast %72 : vector<1x64xf32> to vector<1x1x64xf32>
      tpu.vector_store %arg10[%c0_50, %73, %c0_51], %76 {strides = array<i32>} : memref<1x5x64xf32, #tpu.memory_space<vmem>>, vector<1x1x64xf32>,
    }
    %c5_i32_16 = arith.constant 5 : i32
    %c0_17 = arith.constant 0 : index
    %c0_18 = arith.constant 0 : index
    %c0_19 = arith.constant 0 : index
    %23 = vector.load %arg8[%c0_17, %c0_18, %c0_19] : memref<1x5x64xf32, #tpu.memory_space<vmem>>, vector<1x5x64xf32>
    %24 = vector.shape_cast %23 : vector<1x5x64xf32> to vector<5x64xf32>
    %c0_20 = arith.constant 0 : index
    %c0_21 = arith.constant 0 : index
    %c0_22 = arith.constant 0 : index
    %25 = vector.load %arg10[%c0_20, %c0_21, %c0_22] : memref<1x5x64xf32, #tpu.memory_space<vmem>>, vector<1x5x64xf32>
    %26 = vector.shape_cast %25 : vector<1x5x64xf32> to vector<5x64xf32>
    %c0_23 = arith.constant 0 : index
    %c0_24 = arith.constant 0 : index
    %c0_25 = arith.constant 0 : index
    %27 = vector.load %arg1[%c0_23, %c0_24, %c0_25] : memref<1x5x64xf32, #tpu.memory_space<vmem>>, vector<1x5x64xf32>
    %28 = vector.shape_cast %27 : vector<1x5x64xf32> to vector<5x64xf32>
    %c0_26 = arith.constant 0 : index
    %c0_27 = arith.constant 0 : index
    %29 = vector.load %arg7[%c0_26, %c0_27] : memref<1x64xf32, #tpu.memory_space<vmem>>, vector<1x64xf32>
    %30 = vector.broadcast %29 : vector<1x64xf32> to vector<5x64xf32>
    %31 = arith.mulf %28, %30 : vector<5x64xf32>
    %32 = arith.addf %26, %31 : vector<5x64xf32>
    %cst_28 = arith.constant 0.000000e+00 : f32
    %33 = vector.broadcast %cst_28 : f32 to vector<5x64xf32>
    %34 = arith.subf %33, %24 : vector<5x64xf32>
    %35 = math.exp %34 : vector<5x64xf32>
    %cst_29 = arith.constant 1.000000e+00 : f32
    %36 = vector.broadcast %cst_29 : f32 to vector<5x64xf32>
    %37 = arith.addf %36, %35 : vector<5x64xf32>
    %cst_30 = arith.constant 1.000000e+00 : f32
    %38 = vector.broadcast %cst_30 : f32 to vector<5x64xf32>
    %39 = arith.divf %38, %37 : vector<5x64xf32>
    %40 = arith.mulf %24, %39 : vector<5x64xf32>
    %41 = arith.mulf %32, %40 : vector<5x64xf32>
    %c0_31 = arith.constant 0 : index
    %c0_32 = arith.constant 0 : index
    %c0_33 = arith.constant 0 : index
    %42 = vector.load %arg10[%c0_31, %c0_32, %c0_33] : memref<1x5x64xf32, #tpu.memory_space<vmem>>, vector<1x5x64xf32>
    %43 = vector.shape_cast %42 : vector<1x5x64xf32> to vector<5x64xf32>
    %44 = vector.shape_cast %41 : vector<5x64xf32> to vector<1x5x64xf32>
    tpu.vector_store %arg10[%c0_31, %c0_32, %c0_33], %44 {strides = array<i32>} : memref<1x5x64xf32, #tpu.memory_space<vmem>>, vector<1x5x64xf32>,
    return
  }
  func.func @transform_0(%arg0: i32) -> (i32, i32, i32) {
    %c0_i32 = arith.constant 0 : i32
    %c0_i32_0 = arith.constant 0 : i32
    %c0_i32_1 = arith.constant 0 : i32
    return %arg0, %c0_i32, %c0_i32_0 : i32, i32, i32
  }
  func.func @transform_1(%arg0: i32) -> (i32, i32, i32) {
    %c0_i32 = arith.constant 0 : i32
    %c0_i32_0 = arith.constant 0 : i32
    %c0_i32_1 = arith.constant 0 : i32
    return %arg0, %c0_i32, %c0_i32_0 : i32, i32, i32
  }
  func.func @transform_2(%arg0: i32) -> (i32, i32) {
    %c0_i32 = arith.constant 0 : i32
    %c0_i32_0 = arith.constant 0 : i32
    %c0_i32_1 = arith.constant 0 : i32
    return %c0_i32, %c0_i32_0 : i32, i32
  }
  func.func @transform_3(%arg0: i32) -> (i32, i32) {
    %c0_i32 = arith.constant 0 : i32
    %c0_i32_0 = arith.constant 0 : i32
    %c0_i32_1 = arith.constant 0 : i32
    return %c0_i32, %c0_i32_0 : i32, i32
  }
  func.func @transform_4(%arg0: i32) -> (i32, i32, i32) {
    %c0_i32 = arith.constant 0 : i32
    %c0_i32_0 = arith.constant 0 : i32
    %c0_i32_1 = arith.constant 0 : i32
    return %arg0, %c0_i32, %c0_i32_0 : i32, i32, i32
  }
  func.func @transform_5(%arg0: i32) -> (i32, i32, i32) {
    %c0_i32 = arith.constant 0 : i32
    %c0_i32_0 = arith.constant 0 : i32
    %c0_i32_1 = arith.constant 0 : i32
    return %arg0, %c0_i32, %c0_i32_0 : i32, i32, i32
  }
  func.func @transform_6(%arg0: i32) -> (i32, i32) {
    %c0_i32 = arith.constant 0 : i32
    %c0_i32_0 = arith.constant 0 : i32
    %c0_i32_1 = arith.constant 0 : i32
    return %c0_i32, %c0_i32_0 : i32, i32
  }
  func.func @transform_7(%arg0: i32) -> (i32, i32, i32) {
    %c0_i32 = arith.constant 0 : i32
    %c0_i32_0 = arith.constant 0 : i32
    %c0_i32_1 = arith.constant 0 : i32
    return %arg0, %c0_i32, %c0_i32_0 : i32, i32, i32
  }
  func.func @transform_8(%arg0: i32) -> (i32, i32) {
    %c0_i32 = arith.constant 0 : i32
    %c0_i32_0 = arith.constant 0 : i32
    %c0_i32_1 = arith.constant 0 : i32
    return %c0_i32, %c0_i32_0 : i32, i32
  }
  func.func @transform_9(%arg0: i32) -> (i32, i32, i32) {
    %c0_i32 = arith.constant 0 : i32
    %c0_i32_0 = arith.constant 0 : i32
    %c0_i32_1 = arith.constant 0 : i32
    return %arg0, %c0_i32, %c0_i32_0 : i32, i32, i32
  }
}

module attributes {stable_mosaic.version = 11 : i64} {
  func.func @_ssm_scan_kernel(%arg0: i32, %arg1: memref<1x5x64xf32, #tpu.memory_space<vmem>>, %arg2: memref<1x5x64xf32, #tpu.memory_space<vmem>>, %arg3: memref<1x64xf32, #tpu.memory_space<vmem>>, %arg4: memref<16x64xf32, #tpu.memory_space<vmem>>, %arg5: memref<1x5x16xf32, #tpu.memory_space<vmem>>, %arg6: memref<1x5x16xf32, #tpu.memory_space<vmem>>, %arg7: memref<1x64xf32, #tpu.memory_space<vmem>>, %arg8: memref<1x5x64xf32, #tpu.memory_space<vmem>>, %arg9: memref<16x16xf32, #tpu.memory_space<vmem>>, %arg10: memref<1x5x64xf32, #tpu.memory_space<vmem>>, %arg11: memref<16x64xf32, #tpu.memory_space<vmem>>, %arg12: memref<5x64xf32, #tpu.memory_space<vmem>>, %arg13: memref<5x64xf32, #tpu.memory_space<vmem>>) attributes {dimension_semantics = [#tpu.dimension_semantics<parallel>], iteration_bounds = array<i64: 2>, scalar_prefetch = 0 : i64, scratch_operands = 3 : i64, tpu.core_type = #tpu.core_type<tc>, window_params = [{transform_indices = @transform_0, window_bounds = array<i64: 1, 5, 64>}, {transform_indices = @transform_1, window_bounds = array<i64: 1, 5, 64>}, {pipeline_mode = #tpu.pipeline_mode<synchronous>, transform_indices = @transform_2, window_bounds = array<i64: 1, 64>}, {pipeline_mode = #tpu.pipeline_mode<synchronous>, transform_indices = @transform_3, window_bounds = array<i64: 16, 64>}, {transform_indices = @transform_4, window_bounds = array<i64: 1, 5, 16>}, {transform_indices = @transform_5, window_bounds = array<i64: 1, 5, 16>}, {pipeline_mode = #tpu.pipeline_mode<synchronous>, transform_indices = @transform_6, window_bounds = array<i64: 1, 64>}, {transform_indices = @transform_7, window_bounds = array<i64: 1, 5, 64>}, {pipeline_mode = #tpu.pipeline_mode<synchronous>, transform_indices = @transform_8, window_bounds = array<i64: 16, 16>}, {transform_indices = @transform_9, window_bounds = array<i64: 1, 5, 64>}]} {
    %c0 = arith.constant 0 : index
    %c0_0 = arith.constant 0 : index
    %c0_1 = arith.constant 0 : index
    %0 = vector.load %arg2[%c0, %c0_0, %c0_1] : memref<1x5x64xf32, #tpu.memory_space<vmem>>, vector<1x5x64xf32>
    %1 = vector.shape_cast %0 : vector<1x5x64xf32> to vector<5x64xf32>
    %c0_2 = arith.constant 0 : index
    %c0_3 = arith.constant 0 : index
    %2 = vector.load %arg3[%c0_2, %c0_3] : memref<1x64xf32, #tpu.memory_space<vmem>>, vector<1x64xf32>
    %3 = vector.broadcast %2 : vector<1x64xf32> to vector<5x64xf32>
    %4 = arith.addf %1, %3 : vector<5x64xf32>
    %cst = arith.constant 0.000000e+00 : f32
    %5 = vector.broadcast %cst : f32 to vector<5x64xf32>
    %6 = arith.maximumf %4, %5 : vector<5x64xf32>
    %7 = math.absf %4 : vector<5x64xf32>
    %cst_4 = arith.constant 0.000000e+00 : f32
    %8 = vector.broadcast %cst_4 : f32 to vector<5x64xf32>
    %9 = arith.subf %8, %7 : vector<5x64xf32>
    %10 = math.exp %9 : vector<5x64xf32>
    %cst_5 = arith.constant 1.000000e+00 : f32
    %11 = vector.broadcast %cst_5 : f32 to vector<5x64xf32>
    %12 = arith.addf %11, %10 : vector<5x64xf32>
    %13 = math.log %12 : vector<5x64xf32>
    %14 = arith.addf %6, %13 : vector<5x64xf32>
    %c0_6 = arith.constant 0 : index
    %c0_7 = arith.constant 0 : index
    %15 = vector.load %arg12[%c0_6, %c0_7] : memref<5x64xf32, #tpu.memory_space<vmem>>, vector<5x64xf32>
    tpu.vector_store %arg12[%c0_6, %c0_7], %14 {strides = array<i32>} : memref<5x64xf32, #tpu.memory_space<vmem>>, vector<5x64xf32>,
    %c0_8 = arith.constant 0 : index
    %c0_9 = arith.constant 0 : index
    %c0_10 = arith.constant 0 : index
    %16 = vector.load %arg1[%c0_8, %c0_9, %c0_10] : memref<1x5x64xf32, #tpu.memory_space<vmem>>, vector<1x5x64xf32>
    %17 = vector.shape_cast %16 : vector<1x5x64xf32> to vector<5x64xf32>
    %18 = arith.mulf %14, %17 : vector<5x64xf32>
    %c0_11 = arith.constant 0 : index
    %c0_12 = arith.constant 0 : index
    %19 = vector.load %arg13[%c0_11, %c0_12] : memref<5x64xf32, #tpu.memory_space<vmem>>, vector<5x64xf32>
    tpu.vector_store %arg13[%c0_11, %c0_12], %18 {strides = array<i32>} : memref<5x64xf32, #tpu.memory_space<vmem>>, vector<5x64xf32>,
    %cst_13 = arith.constant 0.000000e+00 : f32
    %20 = vector.broadcast %cst_13 : f32 to vector<16x64xf32>
    %c0_14 = arith.constant 0 : index
    %c0_15 = arith.constant 0 : index
    %21 = vector.load %arg11[%c0_14, %c0_15] : memref<16x64xf32, #tpu.memory_space<vmem>>, vector<16x64xf32>
    tpu.vector_store %arg11[%c0_14, %c0_15], %20 {strides = array<i32>} : memref<16x64xf32, #tpu.memory_space<vmem>>, vector<16x64xf32>,
    %c0_i32 = arith.constant 0 : i32
    %c5_i32 = arith.constant 5 : i32
    %22 = arith.addi %c0_i32, %c5_i32 : i32
    %c1_i32 = arith.constant 1 : i32
    scf.for %arg14 = %c0_i32 to %22 step %c1_i32  : i32 {
      %45 = arith.index_cast %arg14 : i32 to index
      %c0_34 = arith.constant 0 : index
      %46 = vector.load %arg12[%45, %c0_34] : memref<5x64xf32, #tpu.memory_space<vmem>>, vector<1x64xf32>
      %c0_35 = arith.constant 0 : index
      %c0_36 = arith.constant 0 : index
      %47 = vector.load %arg4[%c0_35, %c0_36] : memref<16x64xf32, #tpu.memory_space<vmem>>, vector<16x64xf32>
      %48 = vector.broadcast %46 : vector<1x64xf32> to vector<16x64xf32>
      %49 = arith.mulf %47, %48 : vector<16x64xf32>
      %50 = math.exp %49 : vector<16x64xf32>
      %c0_37 = arith.constant 0 : index
      %51 = arith.index_cast %arg14 : i32 to index
      %c0_38 = arith.constant 0 : index
      %52 = vector.load %arg5[%c0_37, %51, %c0_38] : memref<1x5x16xf32, #tpu.memory_space<vmem>>, vector<1x1x16xf32>
      %53 = vector.shape_cast %52 : vector<1x1x16xf32> to vector<1x16xf32>
      %c0_39 = arith.constant 0 : index
      %c0_40 = arith.constant 0 : index
      %54 = vector.load %arg9[%c0_39, %c0_40] : memref<16x16xf32, #tpu.memory_space<vmem>>, vector<16x16xf32>
      %55 = vector.broadcast %53 : vector<1x16xf32> to vector<16x16xf32>
      %56 = arith.mulf %54, %55 : vector<16x16xf32>
      %cst_41 = arith.constant dense<0.000000e+00> : vector<16xf32>
      %57 = vector.multi_reduction <add>, %56, %cst_41 [1] : vector<16x16xf32> to vector<16xf32>
      %58 = vector.shape_cast %57 : vector<16xf32> to vector<16x1xf32>
      %c0_42 = arith.constant 0 : index
      %c0_43 = arith.constant 0 : index
      %59 = vector.load %arg11[%c0_42, %c0_43] : memref<16x64xf32, #tpu.memory_space<vmem>>, vector<16x64xf32>
      %60 = arith.mulf %50, %59 : vector<16x64xf32>
      %61 = arith.index_cast %arg14 : i32 to index
      %c0_44 = arith.constant 0 : index
      %62 = vector.load %arg13[%61, %c0_44] : memref<5x64xf32, #tpu.memory_space<vmem>>, vector<1x64xf32>
      %63 = vector.broadcast %58 : vector<16x1xf32> to vector<16x64xf32>
      %64 = vector.broadcast %62 : vector<1x64xf32> to vector<16x64xf32>
      %65 = arith.mulf %63, %64 : vector<16x64xf32>
      %66 = arith.addf %60, %65 : vector<16x64xf32>
      %c0_45 = arith.constant 0 : index
      %c0_46 = arith.constant 0 : index
      %67 = vector.load %arg11[%c0_45, %c0_46] : memref<16x64xf32, #tpu.memory_space<vmem>>, vector<16x64xf32>
      tpu.vector_store %arg11[%c0_45, %c0_46], %66 {strides = array<i32>} : memref<16x64xf32, #tpu.memory_space<vmem>>, vector<16x64xf32>,
      %c0_47 = arith.constant 0 : index
      %68 = arith.index_cast %arg14 : i32 to index
      %c0_48 = arith.constant 0 : index
      %69 = vector.load %arg6[%c0_47, %68, %c0_48] : memref<1x5x16xf32, #tpu.memory_space<vmem>>, vector<1x1x16xf32>
      %70 = vector.shape_cast %69 : vector<1x1x16xf32> to vector<1x16xf32>
      %cst_49 = arith.constant dense<0.000000e+00> : vector<1x64xf32>
      %71 = tpu.matmul %70, %66, %cst_49 {dimension_numbers = #tpu.dot_dimension_numbers<[1], [0], [0], [1], [0, 0, 1, 1], [], []>} : vector<1x16xf32>, vector<16x64xf32>, vector<1x64xf32> -> vector<1x64xf32>
      %c0_50 = arith.constant 0 : index
      %72 = arith.index_cast %arg14 : i32 to index
      %c0_51 = arith.constant 0 : index
      %73 = vector.load %arg10[%c0_50, %72, %c0_51] : memref<1x5x64xf32, #tpu.memory_space<vmem>>, vector<1x1x64xf32>
      %74 = vector.shape_cast %73 : vector<1x1x64xf32> to vector<1x64xf32>
      %75 = vector.shape_cast %71 : vector<1x64xf32> to vector<1x1x64xf32>
      tpu.vector_store %arg10[%c0_50, %72, %c0_51], %75 {strides = array<i32>} : memref<1x5x64xf32, #tpu.memory_space<vmem>>, vector<1x1x64xf32>,
    }
    %c5_i32_16 = arith.constant 5 : i32
    %c0_17 = arith.constant 0 : index
    %c0_18 = arith.constant 0 : index
    %c0_19 = arith.constant 0 : index
    %23 = vector.load %arg8[%c0_17, %c0_18, %c0_19] : memref<1x5x64xf32, #tpu.memory_space<vmem>>, vector<1x5x64xf32>
    %24 = vector.shape_cast %23 : vector<1x5x64xf32> to vector<5x64xf32>
    %c0_20 = arith.constant 0 : index
    %c0_21 = arith.constant 0 : index
    %c0_22 = arith.constant 0 : index
    %25 = vector.load %arg10[%c0_20, %c0_21, %c0_22] : memref<1x5x64xf32, #tpu.memory_space<vmem>>, vector<1x5x64xf32>
    %26 = vector.shape_cast %25 : vector<1x5x64xf32> to vector<5x64xf32>
    %c0_23 = arith.constant 0 : index
    %c0_24 = arith.constant 0 : index
    %c0_25 = arith.constant 0 : index
    %27 = vector.load %arg1[%c0_23, %c0_24, %c0_25] : memref<1x5x64xf32, #tpu.memory_space<vmem>>, vector<1x5x64xf32>
    %28 = vector.shape_cast %27 : vector<1x5x64xf32> to vector<5x64xf32>
    %c0_26 = arith.constant 0 : index
    %c0_27 = arith.constant 0 : index
    %29 = vector.load %arg7[%c0_26, %c0_27] : memref<1x64xf32, #tpu.memory_space<vmem>>, vector<1x64xf32>
    %30 = vector.broadcast %29 : vector<1x64xf32> to vector<5x64xf32>
    %31 = arith.mulf %28, %30 : vector<5x64xf32>
    %32 = arith.addf %26, %31 : vector<5x64xf32>
    %cst_28 = arith.constant 0.000000e+00 : f32
    %33 = vector.broadcast %cst_28 : f32 to vector<5x64xf32>
    %34 = arith.subf %33, %24 : vector<5x64xf32>
    %35 = math.exp %34 : vector<5x64xf32>
    %cst_29 = arith.constant 1.000000e+00 : f32
    %36 = vector.broadcast %cst_29 : f32 to vector<5x64xf32>
    %37 = arith.addf %36, %35 : vector<5x64xf32>
    %cst_30 = arith.constant 1.000000e+00 : f32
    %38 = vector.broadcast %cst_30 : f32 to vector<5x64xf32>
    %39 = arith.divf %38, %37 : vector<5x64xf32>
    %40 = arith.mulf %24, %39 : vector<5x64xf32>
    %41 = arith.mulf %32, %40 : vector<5x64xf32>
    %c0_31 = arith.constant 0 : index
    %c0_32 = arith.constant 0 : index
    %c0_33 = arith.constant 0 : index
    %42 = vector.load %arg10[%c0_31, %c0_32, %c0_33] : memref<1x5x64xf32, #tpu.memory_space<vmem>>, vector<1x5x64xf32>
    %43 = vector.shape_cast %42 : vector<1x5x64xf32> to vector<5x64xf32>
    %44 = vector.shape_cast %41 : vector<5x64xf32> to vector<1x5x64xf32>
    tpu.vector_store %arg10[%c0_31, %c0_32, %c0_33], %44 {strides = array<i32>} : memref<1x5x64xf32, #tpu.memory_space<vmem>>, vector<1x5x64xf32>,
    return
  }
  func.func @transform_0(%arg0: i32) -> (i32, i32, i32) {
    %c0_i32 = arith.constant 0 : i32
    %c0_i32_0 = arith.constant 0 : i32
    %c0_i32_1 = arith.constant 0 : i32
    return %arg0, %c0_i32, %c0_i32_0 : i32, i32, i32
  }
  func.func @transform_1(%arg0: i32) -> (i32, i32, i32) {
    %c0_i32 = arith.constant 0 : i32
    %c0_i32_0 = arith.constant 0 : i32
    %c0_i32_1 = arith.constant 0 : i32
    return %arg0, %c0_i32, %c0_i32_0 : i32, i32, i32
  }
  func.func @transform_2(%arg0: i32) -> (i32, i32) {
    %c0_i32 = arith.constant 0 : i32
    %c0_i32_0 = arith.constant 0 : i32
    %c0_i32_1 = arith.constant 0 : i32
    return %c0_i32, %c0_i32_0 : i32, i32
  }
  func.func @transform_3(%arg0: i32) -> (i32, i32) {
    %c0_i32 = arith.constant 0 : i32
    %c0_i32_0 = arith.constant 0 : i32
    %c0_i32_1 = arith.constant 0 : i32
    return %c0_i32, %c0_i32_0 : i32, i32
  }
  func.func @transform_4(%arg0: i32) -> (i32, i32, i32) {
    %c0_i32 = arith.constant 0 : i32
    %c0_i32_0 = arith.constant 0 : i32
    %c0_i32_1 = arith.constant 0 : i32
    return %arg0, %c0_i32, %c0_i32_0 : i32, i32, i32
  }
  func.func @transform_5(%arg0: i32) -> (i32, i32, i32) {
    %c0_i32 = arith.constant 0 : i32
    %c0_i32_0 = arith.constant 0 : i32
    %c0_i32_1 = arith.constant 0 : i32
    return %arg0, %c0_i32, %c0_i32_0 : i32, i32, i32
  }
  func.func @transform_6(%arg0: i32) -> (i32, i32) {
    %c0_i32 = arith.constant 0 : i32
    %c0_i32_0 = arith.constant 0 : i32
    %c0_i32_1 = arith.constant 0 : i32
    return %c0_i32, %c0_i32_0 : i32, i32
  }
  func.func @transform_7(%arg0: i32) -> (i32, i32, i32) {
    %c0_i32 = arith.constant 0 : i32
    %c0_i32_0 = arith.constant 0 : i32
    %c0_i32_1 = arith.constant 0 : i32
    return %arg0, %c0_i32, %c0_i32_0 : i32, i32, i32
  }
  func.func @transform_8(%arg0: i32) -> (i32, i32) {
    %c0_i32 = arith.constant 0 : i32
    %c0_i32_0 = arith.constant 0 : i32
    %c0_i32_1 = arith.constant 0 : i32
    return %c0_i32, %c0_i32_0 : i32, i32
  }
  func.func @transform_9(%arg0: i32) -> (i32, i32, i32) {
    %c0_i32 = arith.constant 0 : i32
    %c0_i32_0 = arith.constant 0 : i32
    %c0_i32_1 = arith.constant 0 : i32
    return %arg0, %c0_i32, %c0_i32_0 : i32, i32, i32
  }
}

module attributes {stable_mosaic.version = 11 : i64} {
  func.func @_add_rmsnorm_kernel(%arg0: i32, %arg1: memref<16x32xf32, #tpu.memory_space<vmem>>, %arg2: memref<16x32xf32, #tpu.memory_space<vmem>>, %arg3: memref<1x32xf32, #tpu.memory_space<vmem>>, %arg4: memref<16x32xf32, #tpu.memory_space<vmem>>, %arg5: memref<16x32xf32, #tpu.memory_space<vmem>>) attributes {dimension_semantics = [#tpu.dimension_semantics<parallel>], iteration_bounds = array<i64: 1>, scalar_prefetch = 0 : i64, scratch_operands = 0 : i64, tpu.core_type = #tpu.core_type<tc>, window_params = [{transform_indices = @transform_0, window_bounds = array<i64: 16, 32>}, {transform_indices = @transform_1, window_bounds = array<i64: 16, 32>}, {pipeline_mode = #tpu.pipeline_mode<synchronous>, transform_indices = @transform_2, window_bounds = array<i64: 1, 32>}, {transform_indices = @transform_3, window_bounds = array<i64: 16, 32>}, {transform_indices = @transform_4, window_bounds = array<i64: 16, 32>}]} {
    %c0 = arith.constant 0 : index
    %c0_0 = arith.constant 0 : index
    %0 = vector.load %arg1[%c0, %c0_0] : memref<16x32xf32, #tpu.memory_space<vmem>>, vector<16x32xf32>
    %c0_1 = arith.constant 0 : index
    %c0_2 = arith.constant 0 : index
    %1 = vector.load %arg2[%c0_1, %c0_2] : memref<16x32xf32, #tpu.memory_space<vmem>>, vector<16x32xf32>
    %2 = arith.addf %0, %1 : vector<16x32xf32>
    %c0_3 = arith.constant 0 : index
    %c0_4 = arith.constant 0 : index
    %3 = vector.load %arg5[%c0_3, %c0_4] : memref<16x32xf32, #tpu.memory_space<vmem>>, vector<16x32xf32>
    tpu.vector_store %arg5[%c0_3, %c0_4], %2 {strides = array<i32>} : memref<16x32xf32, #tpu.memory_space<vmem>>, vector<16x32xf32>,
    %4 = arith.mulf %2, %2 : vector<16x32xf32>
    %cst = arith.constant dense<0.000000e+00> : vector<16xf32>
    %5 = vector.multi_reduction <add>, %4, %cst [1] : vector<16x32xf32> to vector<16xf32>
    %6 = vector.shape_cast %5 : vector<16xf32> to vector<16x1xf32>
    %cst_5 = arith.constant 3.200000e+01 : f32
    %7 = vector.broadcast %cst_5 : f32 to vector<16x1xf32>
    %8 = arith.divf %6, %7 : vector<16x1xf32>
    %cst_6 = arith.constant 9.99999974E-6 : f32
    %9 = vector.broadcast %cst_6 : f32 to vector<16x1xf32>
    %10 = arith.addf %8, %9 : vector<16x1xf32>
    %11 = math.rsqrt %10 : vector<16x1xf32>
    %12 = vector.broadcast %11 : vector<16x1xf32> to vector<16x32xf32>
    %13 = arith.mulf %2, %12 : vector<16x32xf32>
    %c0_7 = arith.constant 0 : index
    %c0_8 = arith.constant 0 : index
    %14 = vector.load %arg3[%c0_7, %c0_8] : memref<1x32xf32, #tpu.memory_space<vmem>>, vector<1x32xf32>
    %15 = vector.broadcast %14 : vector<1x32xf32> to vector<16x32xf32>
    %16 = arith.mulf %13, %15 : vector<16x32xf32>
    %c0_9 = arith.constant 0 : index
    %c0_10 = arith.constant 0 : index
    %17 = vector.load %arg4[%c0_9, %c0_10] : memref<16x32xf32, #tpu.memory_space<vmem>>, vector<16x32xf32>
    tpu.vector_store %arg4[%c0_9, %c0_10], %16 {strides = array<i32>} : memref<16x32xf32, #tpu.memory_space<vmem>>, vector<16x32xf32>,
    return
  }
  func.func @transform_0(%arg0: i32) -> (i32, i32) {
    %c0_i32 = arith.constant 0 : i32
    %c0_i32_0 = arith.constant 0 : i32
    return %arg0, %c0_i32 : i32, i32
  }
  func.func @transform_1(%arg0: i32) -> (i32, i32) {
    %c0_i32 = arith.constant 0 : i32
    %c0_i32_0 = arith.constant 0 : i32
    return %arg0, %c0_i32 : i32, i32
  }
  func.func @transform_2(%arg0: i32) -> (i32, i32) {
    %c0_i32 = arith.constant 0 : i32
    %c0_i32_0 = arith.constant 0 : i32
    %c0_i32_1 = arith.constant 0 : i32
    return %c0_i32, %c0_i32_0 : i32, i32
  }
  func.func @transform_3(%arg0: i32) -> (i32, i32) {
    %c0_i32 = arith.constant 0 : i32
    %c0_i32_0 = arith.constant 0 : i32
    return %arg0, %c0_i32 : i32, i32
  }
  func.func @transform_4(%arg0: i32) -> (i32, i32) {
    %c0_i32 = arith.constant 0 : i32
    %c0_i32_0 = arith.constant 0 : i32
    return %arg0, %c0_i32 : i32, i32
  }
}

module attributes {stable_mosaic.version = 11 : i64} {
  func.func @_add_rmsnorm_kernel(%arg0: i32, %arg1: memref<16x32xf32, #tpu.memory_space<vmem>>, %arg2: memref<16x32xf32, #tpu.memory_space<vmem>>, %arg3: memref<1x32xf32, #tpu.memory_space<vmem>>, %arg4: memref<16x32xf32, #tpu.memory_space<vmem>>, %arg5: memref<16x32xf32, #tpu.memory_space<vmem>>) attributes {dimension_semantics = [#tpu.dimension_semantics<parallel>], iteration_bounds = array<i64: 1>, scalar_prefetch = 0 : i64, scratch_operands = 0 : i64, tpu.core_type = #tpu.core_type<tc>, window_params = [{transform_indices = @transform_0, window_bounds = array<i64: 16, 32>}, {transform_indices = @transform_1, window_bounds = array<i64: 16, 32>}, {pipeline_mode = #tpu.pipeline_mode<synchronous>, transform_indices = @transform_2, window_bounds = array<i64: 1, 32>}, {transform_indices = @transform_3, window_bounds = array<i64: 16, 32>}, {transform_indices = @transform_4, window_bounds = array<i64: 16, 32>}]} {
    %c0 = arith.constant 0 : index
    %c0_0 = arith.constant 0 : index
    %0 = vector.load %arg1[%c0, %c0_0] : memref<16x32xf32, #tpu.memory_space<vmem>>, vector<16x32xf32>
    %c0_1 = arith.constant 0 : index
    %c0_2 = arith.constant 0 : index
    %1 = vector.load %arg2[%c0_1, %c0_2] : memref<16x32xf32, #tpu.memory_space<vmem>>, vector<16x32xf32>
    %2 = arith.addf %0, %1 : vector<16x32xf32>
    %c0_3 = arith.constant 0 : index
    %c0_4 = arith.constant 0 : index
    %3 = vector.load %arg5[%c0_3, %c0_4] : memref<16x32xf32, #tpu.memory_space<vmem>>, vector<16x32xf32>
    tpu.vector_store %arg5[%c0_3, %c0_4], %2 {strides = array<i32>} : memref<16x32xf32, #tpu.memory_space<vmem>>, vector<16x32xf32>,
    %4 = arith.mulf %2, %2 : vector<16x32xf32>
    %cst = arith.constant dense<0.000000e+00> : vector<16xf32>
    %5 = vector.multi_reduction <add>, %4, %cst [1] : vector<16x32xf32> to vector<16xf32>
    %6 = vector.shape_cast %5 : vector<16xf32> to vector<16x1xf32>
    %cst_5 = arith.constant 3.200000e+01 : f32
    %7 = vector.broadcast %cst_5 : f32 to vector<16x1xf32>
    %8 = arith.divf %6, %7 : vector<16x1xf32>
    %cst_6 = arith.constant 9.99999974E-6 : f32
    %9 = vector.broadcast %cst_6 : f32 to vector<16x1xf32>
    %10 = arith.addf %8, %9 : vector<16x1xf32>
    %11 = math.rsqrt %10 : vector<16x1xf32>
    %12 = vector.broadcast %11 : vector<16x1xf32> to vector<16x32xf32>
    %13 = arith.mulf %2, %12 : vector<16x32xf32>
    %c0_7 = arith.constant 0 : index
    %c0_8 = arith.constant 0 : index
    %14 = vector.load %arg3[%c0_7, %c0_8] : memref<1x32xf32, #tpu.memory_space<vmem>>, vector<1x32xf32>
    %15 = vector.broadcast %14 : vector<1x32xf32> to vector<16x32xf32>
    %16 = arith.mulf %13, %15 : vector<16x32xf32>
    %c0_9 = arith.constant 0 : index
    %c0_10 = arith.constant 0 : index
    %17 = vector.load %arg4[%c0_9, %c0_10] : memref<16x32xf32, #tpu.memory_space<vmem>>, vector<16x32xf32>
    tpu.vector_store %arg4[%c0_9, %c0_10], %16 {strides = array<i32>} : memref<16x32xf32, #tpu.memory_space<vmem>>, vector<16x32xf32>,
    return
  }
  func.func @transform_0(%arg0: i32) -> (i32, i32) {
    %c0_i32 = arith.constant 0 : i32
    %c0_i32_0 = arith.constant 0 : i32
    return %arg0, %c0_i32 : i32, i32
  }
  func.func @transform_1(%arg0: i32) -> (i32, i32) {
    %c0_i32 = arith.constant 0 : i32
    %c0_i32_0 = arith.constant 0 : i32
    return %arg0, %c0_i32 : i32, i32
  }
  func.func @transform_2(%arg0: i32) -> (i32, i32) {
    %c0_i32 = arith.constant 0 : i32
    %c0_i32_0 = arith.constant 0 : i32
    %c0_i32_1 = arith.constant 0 : i32
    return %c0_i32, %c0_i32_0 : i32, i32
  }
  func.func @transform_3(%arg0: i32) -> (i32, i32) {
    %c0_i32 = arith.constant 0 : i32
    %c0_i32_0 = arith.constant 0 : i32
    return %arg0, %c0_i32 : i32, i32
  }
  func.func @transform_4(%arg0: i32) -> (i32, i32) {
    %c0_i32 = arith.constant 0 : i32
    %c0_i32_0 = arith.constant 0 : i32
    return %arg0, %c0_i32 : i32, i32
  }
}

module attributes {stable_mosaic.version = 11 : i64} {
  func.func @_matmul_bias_kernel(%arg0: i32, %arg1: i32, %arg2: i32, %arg3: memref<16x128xbf16, #tpu.memory_space<vmem>>, %arg4: memref<128x128xbf16, #tpu.memory_space<vmem>>, %arg5: memref<1x128xf32, #tpu.memory_space<vmem>>, %arg6: memref<16x128xf32, #tpu.memory_space<vmem>>, %arg7: memref<16x128xf32, #tpu.memory_space<vmem>>) attributes {dimension_semantics = [#tpu.dimension_semantics<parallel>, #tpu.dimension_semantics<parallel>, #tpu.dimension_semantics<arbitrary>], iteration_bounds = array<i64: 1, 1, 1>, scalar_prefetch = 0 : i64, scratch_operands = 1 : i64, tpu.core_type = #tpu.core_type<tc>, window_params = [{transform_indices = @transform_0, window_bounds = array<i64: 16, 128>}, {transform_indices = @transform_1, window_bounds = array<i64: 128, 128>}, {transform_indices = @transform_2, window_bounds = array<i64: 1, 128>}, {transform_indices = @transform_3, window_bounds = array<i64: 16, 128>}]} {
    %c0_i32 = arith.constant 0 : i32
    %0 = arith.cmpi eq, %arg2, %c0_i32 : i32
    %1 = arith.extui %0 : i1 to i32
    %c0_i32_0 = arith.constant 0 : i32
    %2 = arith.cmpi ne, %1, %c0_i32_0 : i32
    scf.if %2 {
      %cst_10 = arith.constant 0.000000e+00 : f32
      %12 = vector.broadcast %cst_10 : f32 to vector<16x128xf32>
      %c0_11 = arith.constant 0 : index
      %c0_12 = arith.constant 0 : index
      %13 = vector.load %arg7[%c0_11, %c0_12] : memref<16x128xf32, #tpu.memory_space<vmem>>, vector<16x128xf32>
      tpu.vector_store %arg7[%c0_11, %c0_12], %12 {strides = array<i32>} : memref<16x128xf32, #tpu.memory_space<vmem>>, vector<16x128xf32>,
    } else {
    }
    %c0 = arith.constant 0 : index
    %c0_1 = arith.constant 0 : index
    %3 = vector.load %arg7[%c0, %c0_1] : memref<16x128xf32, #tpu.memory_space<vmem>>, vector<16x128xf32>
    %c0_2 = arith.constant 0 : index
    %c0_3 = arith.constant 0 : index
    %4 = vector.load %arg3[%c0_2, %c0_3] : memref<16x128xbf16, #tpu.memory_space<vmem>>, vector<16x128xbf16>
    %c0_4 = arith.constant 0 : index
    %c0_5 = arith.constant 0 : index
    %5 = vector.load %arg4[%c0_4, %c0_5] : memref<128x128xbf16, #tpu.memory_space<vmem>>, vector<128x128xbf16>
    %cst = arith.constant dense<0.000000e+00> : vector<16x128xf32>
    %6 = tpu.matmul %4, %5, %cst {dimension_numbers = #tpu.dot_dimension_numbers<[1], [0], [0], [1], [0, 0, 1, 1], [], []>} : vector<16x128xbf16>, vector<128x128xbf16>, vector<16x128xf32> -> vector<16x128xf32>
    %7 = arith.addf %3, %6 : vector<16x128xf32>
    %c0_6 = arith.constant 0 : index
    %c0_7 = arith.constant 0 : index
    %8 = vector.load %arg7[%c0_6, %c0_7] : memref<16x128xf32, #tpu.memory_space<vmem>>, vector<16x128xf32>
    tpu.vector_store %arg7[%c0_6, %c0_7], %7 {strides = array<i32>} : memref<16x128xf32, #tpu.memory_space<vmem>>, vector<16x128xf32>,
    %c0_i32_8 = arith.constant 0 : i32
    %9 = arith.cmpi eq, %arg2, %c0_i32_8 : i32
    %10 = arith.extui %9 : i1 to i32
    %c0_i32_9 = arith.constant 0 : i32
    %11 = arith.cmpi ne, %10, %c0_i32_9 : i32
    scf.if %11 {
      %c0_10 = arith.constant 0 : index
      %c0_11 = arith.constant 0 : index
      %12 = vector.load %arg7[%c0_10, %c0_11] : memref<16x128xf32, #tpu.memory_space<vmem>>, vector<16x128xf32>
      %c0_12 = arith.constant 0 : index
      %c0_13 = arith.constant 0 : index
      %13 = vector.load %arg5[%c0_12, %c0_13] : memref<1x128xf32, #tpu.memory_space<vmem>>, vector<1x128xf32>
      %14 = vector.broadcast %13 : vector<1x128xf32> to vector<16x128xf32>
      %15 = arith.addf %12, %14 : vector<16x128xf32>
      %c0_14 = arith.constant 0 : index
      %c0_15 = arith.constant 0 : index
      %16 = vector.load %arg6[%c0_14, %c0_15] : memref<16x128xf32, #tpu.memory_space<vmem>>, vector<16x128xf32>
      tpu.vector_store %arg6[%c0_14, %c0_15], %15 {strides = array<i32>} : memref<16x128xf32, #tpu.memory_space<vmem>>, vector<16x128xf32>,
    } else {
    }
    return
  }
  func.func @transform_0(%arg0: i32, %arg1: i32, %arg2: i32) -> (i32, i32) {
    %c0_i32 = arith.constant 0 : i32
    return %arg0, %arg2 : i32, i32
  }
  func.func @transform_1(%arg0: i32, %arg1: i32, %arg2: i32) -> (i32, i32) {
    %c0_i32 = arith.constant 0 : i32
    return %arg2, %arg1 : i32, i32
  }
  func.func @transform_2(%arg0: i32, %arg1: i32, %arg2: i32) -> (i32, i32) {
    %c0_i32 = arith.constant 0 : i32
    %c0_i32_0 = arith.constant 0 : i32
    return %c0_i32, %arg1 : i32, i32
  }
  func.func @transform_3(%arg0: i32, %arg1: i32, %arg2: i32) -> (i32, i32) {
    %c0_i32 = arith.constant 0 : i32
    return %arg0, %arg1 : i32, i32
  }
}

</mosaic_0001>

<bundles_post_ra>
// kernel: videomamba_forward.27
= control target key start
LH: loop header
LB: loop body
LE: loop exit
PB: predicated region body
PF: predicated region fallthrough
CT: control target
= control target key end

     0   :  { %s321_s12 = smov 0   ;;  %s353_s0 = inlined_call_operand.vmem [shape: f32[2,8,64], index: 0, kind: input, shape index: {}]   ;;  %s354_s1 = inlined_call_operand.vmem [shape: f32[4,64], index: 1, kind: input, shape index: {}]   ;;  %s355_s2 = inlined_call_operand.vmem [shape: f32[1,64], index: 2, kind: input, shape index: {}]   ;;  %s356_s3 = inlined_call_operand.vmem [shape: f32[2,5,64], index: 3, kind: output, shape index: {}]  }
   0x1 LB: > { %s267_s13 = sadd.s32 4294967295, %s299_s12   ;;  %p271_p0 = scmp.ge.s32.totalorder %s299_s12, 1  ;;  %s299_s12 = sphi %s321_s12, %s13_s12  }
   0x2   : > { %p136_p1 = scmp.lt.s32.totalorder %s299_s12, 3 }
   0x4   : > { %p137_p2 = pnand %p271_p0, %p136_p1 }
   0x5   : > { %p158_p3 = scmp.lt.s32.totalorder (!%p137_p2), %s267_s13, 1  ;;  %v274_v0 = vld [vmem:[%s354_s1] ss:$0 sm:$0xff] (!%p137_p2)  ;;  %v276_v1 = vld [vmem:[%s354_s1 + $0x1] ss:$0 sm:$0xff] (!%p137_p2)  ;;  %vm212_vm0 = vcmask (!%p137_p2), 520192  }
   0x6   : > { %140 = sbr.rel (%p137_p2) target bundleno = 58 (0x3a), region = 32  ;;  %v275_v2 = vld [vmem:[%s355_s2] ss:$0 sm:$0xff] (!%p137_p2)  ;;  %v277_v3 = vld [vmem:[%s354_s1 + $0x2] ss:$0 sm:$0xff] (!%p137_p2) }
   0x7   : > { %v278_v10 = vld [vmem:[%s354_s1 + $0x3] ss:$0 sm:$0xff] (!%p137_p2) }
   0xd   : > { %s358_s13 = smov (!%p158_p3, %s267_s13), 1 }
   0xe   : > { %s272_s14 = sshll.u32 %s358_s13, 3 }
   0xf   : > { %s161_s21 = scalar_lea.vmem %s353_s0, %s272_s14  ;;  %s165_s30 = scalar_lea.vmem %s356_s3, %s272_s14 }
  0x10   : > { %v167_v4 = vld [vmem:[%s161_s21] sm:$0x1f] }
  0x11   : > { %v181_v5 = vld [vmem:[%s161_s21 + $0x1] sm:$0x1f]  ;;  %v173_v7 = vmul.f32 %v274_v0, %v167_v4 }
  0x12   : > { %v189_v6 = vld [vmem:[%s161_s21 + $0x2] sm:$0x1f]  ;;  %v187_v8 = vmul.f32 %v276_v1, %v181_v5 }
  0x13   : > { %v197_v9 = vld [vmem:[%s161_s21 + $0x3] sm:$0x1f]  ;;  %v180_v11 = vadd.f32 %v275_v2, %v173_v7  ;;  %v195_v12 = vmul.f32 %v277_v3, %v189_v6 }
  0x14   : > { %v203_v14 = vmul.f32 %v278_v10, %v197_v9 }
  0x15   : > { %v188_v13 = vadd.f32 %v187_v8, %v180_v11 }
  0x17   : > { %v196_v15 = vadd.f32 %v195_v12, %v188_v13 }
  0x19   : > { %v204_v16 = vadd.f32 %v203_v14, %v196_v15 }
  0x1b   : > { %v205_v17 = vsub.f32 0.0, %v204_v16 }
  0x1d   : > { %v206_v18 = vmul.f32 1.442695, %v205_v17 }
  0x1f   : > { %289 = vpow2.f32 %v206_v18 }
  0x29   : > { %v290_v19 = vpop.eup %289 }
  0x2a   : > { %v208_v20 = vadd.f32 1.0, %v290_v19 }
  0x2c   : > { %291 = vrcp.f32 %v208_v20 }
  0x36   : > { %v292_v21 = vpop.eup %291 }
  0x37   : > { %v211_v22 = vmul.f32 %v292_v21, %v204_v16 }
  0x39   : > { %213 = vst.msk [vmem:[%s165_s30] sm:$0x1f] %vm212_vm0, %v211_v22 }
  0x3a PF: > { %s13_s12 = sadd.s32 1, %s299_s12  }
  0x3b   : > { %p10_p4 = scmp.ge.s32.totalorder %s13_s12, 4  }
  0x3d   :  { %12 = sbr.rel (!%p10_p4) target bundleno = 1 (0x1), region = 62 }

// kernel: videomamba_forward.23
= control target key start
LH: loop header
LB: loop body
LE: loop exit
PB: predicated region body
PF: predicated region fallthrough
CT: control target
= control target key end

     0   :  { %v197_v0 = vmov 0.0   ;;  %vm198_vm0 = vmmov 0   ;;  %s247_s1 = inlined_call_operand.vmem [shape: bf16[128,128], index: 1, kind: input, shape index: {}]   ;;  %s248_s0 = inlined_call_operand.vmem [shape: bf16[16,128], index: 0, kind: input, shape index: {}]   ;;  %s249_s2 = inlined_call_operand.vmem [shape: f32[16,128], index: 2, kind: output, shape index: {}]  }
   0x1   :  { %166 = vmatprep.subr.bf16.mxu0 %v197_v0  ;;  %v188_v1 = vld [vmem:[%s247_s1] sm:$0xff]   ;;  %182 = vmatprep.mubr.msk.bf16.mxu0 %vm198_vm0, %v197_v0  ;;  %v189_v2 = vld [vmem:[%s247_s1 + $0x8] sm:$0xff]   ;;  %v190_v3 = vld [vmem:[%s247_s1 + $0x10] sm:$0xff]  }
   0x2   :  { %167 = vmatpush3.bf16.msra.mxu0 %v188_v1  ;;  %v191_v4 = vld [vmem:[%s247_s1 + $0x18] sm:$0xff]   ;;  %v192_v5 = vld [vmem:[%s247_s1 + $0x20] sm:$0xff]   ;;  %v193_v6 = vld [vmem:[%s247_s1 + $0x28] sm:$0xff]  }
   0x3   :  { %168 = vmatprep.subr.bf16.mxu0 %v197_v0  ;;  %v194_v7 = vld [vmem:[%s247_s1 + $0x30] sm:$0xff]   ;;  %v195_v8 = vld [vmem:[%s247_s1 + $0x38] sm:$0xff]   ;;  %v196_v9 = vld [vmem:[%s248_s0] sm:$0xff]  }
   0x6   :  { %169 = vmatpush3.bf16.msra.mxu0 %v189_v2 }
   0x7   :  { %170 = vmatprep.subr.bf16.mxu0 %v197_v0 }
   0xa   :  { %171 = vmatpush3.bf16.msra.mxu0 %v190_v3 }
   0xb   :  { %172 = vmatprep.subr.bf16.mxu0 %v197_v0 }
   0xe   :  { %173 = vmatpush3.bf16.msra.mxu0 %v191_v4 }
   0xf   :  { %174 = vmatprep.subr.bf16.mxu0 %v197_v0 }
  0x12   :  { %175 = vmatpush3.bf16.msra.mxu0 %v192_v5 }
  0x13   :  { %176 = vmatprep.subr.bf16.mxu0 %v197_v0 }
  0x16   :  { %177 = vmatpush3.bf16.msra.mxu0 %v193_v6 }
  0x17   :  { %178 = vmatprep.subr.bf16.mxu0 %v197_v0 }
  0x1a   :  { %179 = vmatpush3.bf16.msra.mxu0 %v194_v7 }
  0x1b   :  { %180 = vmatprep.subr.bf16.mxu0 %v197_v0 }
  0x1e   :  { %181 = vmatpush3.bf16.msra.mxu0 %v195_v8 }
  0x21   :  { %183 = vmatmul.mubr.bf16.vlgmr.msra.gmra.mrb[0].mxu0 %v196_v9 }
  0xf4   :  { %v126_v10 = vpop.f32.mrb[0].mxu0 }
  0xf5   :  { %142 = vst [vmem:[%s249_s2] sm:$0xff] %v126_v10  ;;  %v184_v11 = vpop.f32.mrb[1].mxu0 }
  0xf6   :  { %v129_v12 = vpop.f32.mrb[2].mxu0 }
  0xf7   :  { %143 = vst [vmem:[%s249_s2 + $0x8] sm:$0xff] %v129_v12  ;;  %v185_v13 = vpop.f32.mrb[3].mxu0 }

// kernel: videomamba_forward.22
= control target key start
LH: loop header
LB: loop body
LE: loop exit
PB: predicated region body
PF: predicated region fallthrough
CT: control target
= control target key end

     0   :  { %vm15_vm0 = vcmask 261120   ;;  %s85_s0 = inlined_call_operand.vmem [shape: f32[16,32], index: 0, kind: input, shape index: {}]   ;;  %s86_s1 = inlined_call_operand.vmem [shape: f32[1,32], index: 1, kind: input, shape index: {}]   ;;  %s87_s2 = inlined_call_operand.vmem [shape: f32[16,32], index: 2, kind: output, shape index: {}]  }
   0x1   :  { %v11_v0 = vld [vmem:[%s85_s0] sm:$0xff]  ;;  %v12_v1 = vld [vmem:[%s85_s0 + $0x8] sm:$0xff] }
   0x2   :  { %v13_v2 = vmul.f32 %v11_v0, %v11_v0  ;;  %v14_v3 = vmul.f32 %v12_v1, %v12_v1  ;;  %v46_v13 = vld [vmem:[%s86_s1] ss:$0 sm:$0xff] }
   0x4   :  { %v16_v4 = vsel %vm15_vm0, %v13_v2, 0.0  ;;  %v19_v5 = vsel %vm15_vm0, %v14_v3, 0.0 }
   0x5   :  { %17 = vadd.xlane.f32.xlu0 %v16_v4 }
   0x9   :  { %20 = vadd.xlane.f32.xlu0 %v19_v5 }
  0x92   :  { %v18_v6 = vpop.xlane.xlu0 %17 }
  0x93   :  { %v23_v7 = vmul.f32 0.03125, %v18_v6 }
  0x95   :  { %v25_v8 = vadd.f32 1e-05, %v23_v7 }
  0x96   :  { %v21_v9 = vpop.xlane.xlu0 %20 }
  0x97   :  { %47 = vrsqrt.f32 %v25_v8  ;;  %v24_v10 = vmul.f32 0.03125, %v21_v9 }
  0x99   :  { %v26_v11 = vadd.f32 1e-05, %v24_v10 }
  0x9b   :  { %49 = vrsqrt.f32 %v26_v11 }
  0xa1   :  { %v48_v12 = vpop.eup %47 }
  0xa2   :  { %v29_v14 = vmul.f32 %v48_v12, %v11_v0 }
  0xa4   :  { %v38_v15 = vmul.f32 %v46_v13, %v29_v14 }
  0xa5   :  { %v50_v16 = vpop.eup %49 }
  0xa6   :  { %40 = vst.msk [vmem:[%s87_s2] sm:$0xff] %vm15_vm0, %v38_v15  ;;  %v30_v17 = vmul.f32 %v50_v16, %v12_v1 }
  0xa8   :  { %v39_v18 = vmul.f32 %v46_v13, %v30_v17 }
  0xaa   :  { %41 = vst.msk [vmem:[%s87_s2 + $0x8] sm:$0xff] %vm15_vm0, %v39_v18 }

// kernel: videomamba_forward.21
= control target key start
LH: loop header
LB: loop body
LE: loop exit
PB: predicated region body
PF: predicated region fallthrough
CT: control target
= control target key end

     0   :  { %s371_s1 = inlined_call_operand.vmem [shape: bf16[256,128], index: 1, kind: input, shape index: {}]   ;;  %s372_s0 = inlined_call_operand.vmem [shape: bf16[16,256], index: 0, kind: input, shape index: {}]   ;;  %s373_s2 = inlined_call_operand.vmem [shape: f32[1,128], index: 2, kind: input, shape index: {}]   ;;  %s374_s3 = inlined_call_operand.vmem [shape: f32[16,128], index: 3, kind: output, shape index: {}]  }
   0x1   :  { %v269_v0 = vld [vmem:[%s371_s1 + $0x40] sm:$0xff]   ;;  %v271_v2 = vld [vmem:[%s371_s1 + $0x48] sm:$0xff]   ;;  %v273_v4 = vld [vmem:[%s371_s1 + $0x50] sm:$0xff]  }
   0x2   :  { %v270_v1 = vld [vmem:[%s371_s1] sm:$0xff]   ;;  %247 = vmatprep.subr.bf16.mxu0 %v269_v0  ;;  %v272_v3 = vld [vmem:[%s371_s1 + $0x8] sm:$0xff]   ;;  %v274_v5 = vld [vmem:[%s371_s1 + $0x10] sm:$0xff]  }
   0x3   :  { %248 = vmatpush3.bf16.msra.mxu0 %v270_v1  ;;  %v275_v6 = vld [vmem:[%s371_s1 + $0x58] sm:$0xff]   ;;  %v277_v8 = vld [vmem:[%s371_s1 + $0x60] sm:$0xff]   ;;  %v279_v10 = vld [vmem:[%s371_s1 + $0x68] sm:$0xff]  }
   0x4   :  { %249 = vmatprep.subr.bf16.mxu0 %v271_v2  ;;  %v276_v7 = vld [vmem:[%s371_s1 + $0x18] sm:$0xff]   ;;  %v278_v9 = vld [vmem:[%s371_s1 + $0x20] sm:$0xff]   ;;  %v280_v12 = vld [vmem:[%s371_s1 + $0x28] sm:$0xff]  }
   0x5   :  { %v287_v11 = vld [vmem:[%s372_s0 + $0x4] ss:$8 sps:$4 sm:$0xff]   ;;  %v281_v13 = vld [vmem:[%s371_s1 + $0x70] sm:$0xff]   ;;  %v283_v15 = vld [vmem:[%s371_s1 + $0x78] sm:$0xff]  }
   0x6   :  { %195 = vmatprep.mubr.bf16.mxu0 %v287_v11  ;;  %v282_v14 = vld [vmem:[%s371_s1 + $0x30] sm:$0xff]   ;;  %v284_v16 = vld [vmem:[%s371_s1 + $0x38] sm:$0xff]   ;;  %v285_v17 = vld [vmem:[%s372_s0] ss:$8 sps:$4 sm:$0xff]  }
   0x7   :  { %250 = vmatpush3.bf16.msra.mxu0 %v272_v3  ;;  %v246_v20 = vld [vmem:[%s373_s2] ss:$0 sm:$0xff] }
   0x8   :  { %251 = vmatprep.subr.bf16.mxu0 %v273_v4 }
   0xb   :  { %252 = vmatpush3.bf16.msra.mxu0 %v274_v5 }
   0xc   :  { %253 = vmatprep.subr.bf16.mxu0 %v275_v6 }
   0xf   :  { %254 = vmatpush3.bf16.msra.mxu0 %v276_v7 }
  0x10   :  { %255 = vmatprep.subr.bf16.mxu0 %v277_v8 }
  0x13   :  { %256 = vmatpush3.bf16.msra.mxu0 %v278_v9 }
  0x14   :  { %257 = vmatprep.subr.bf16.mxu0 %v279_v10 }
  0x17   :  { %258 = vmatpush3.bf16.msra.mxu0 %v280_v12 }
  0x18   :  { %259 = vmatprep.subr.bf16.mxu0 %v281_v13 }
  0x1b   :  { %260 = vmatpush3.bf16.msra.mxu0 %v282_v14 }
  0x1c   :  { %261 = vmatprep.subr.bf16.mxu0 %v283_v15 }
  0x1f   :  { %262 = vmatpush3.bf16.msra.mxu0 %v284_v16 }
  0x22   :  { %196 = vmatmul.mubr.bf16.vlgmr.msra.gmra.mrb[0].mxu0 %v285_v17 }
  0xf5   :  { %v263_v18 = vpop.f32.mrb[0].mxu0 }
  0xf6   :  { %v264_v19 = vpop.f32.mrb[1].mxu0 }
  0xf7   :  { %v265_v21 = vadd.f32 %v264_v19, %v263_v18  ;;  %v266_v22 = vpop.f32.mrb[2].mxu0 }
  0xf8   :  { %v267_v23 = vpop.f32.mrb[3].mxu0 }
  0xf9   :  { %v220_v24 = vadd.f32 %v265_v21, %v246_v20  ;;  %v268_v25 = vadd.f32 %v267_v23, %v266_v22 }
  0xfb   :  { %222 = vst [vmem:[%s374_s3] sm:$0xff] %v220_v24  ;;  %v221_v26 = vadd.f32 %v268_v25, %v246_v20 }
  0xfd   :  { %223 = vst [vmem:[%s374_s3 + $0x8] sm:$0xff] %v221_v26 }

// kernel: videomamba_forward.28
= control target key start
LH: loop header
LB: loop body
LE: loop exit
PB: predicated region body
PF: predicated region fallthrough
CT: control target
= control target key end

     0   :  { %v249_v0 = vmov 0.0   ;;  %vm250_vm0 = vmmov 0   ;;  %vm56_vm1 = vcmask 523264   ;;  %vm109_vm2 = vcmask 1041408   ;;  %s251_s27 = smov 126   ;;  %s310_s1 = inlined_call_operand.vmem [shape: bf16[64,34], index: 1, kind: input, shape index: {}]   ;;  %s311_s0 = inlined_call_operand.vmem [shape: bf16[16,64], index: 0, kind: input, shape index: {}]   ;;  %s312_s2 = inlined_call_operand.vmem [shape: f32[2,64], index: 2, kind: input, shape index: {}]   ;;  %s313_s4 = inlined_call_operand.vmem [shape: f32[16,32], index: 4, kind: output, shape index: {1}]   ;;  %s314_s3 = inlined_call_operand.vmem [shape: f32[16,64], index: 3, kind: output, shape index: {0}]  }
   0x1   :  { %224 = vmatprep.subr.bf16.mxu0 %v249_v0  ;;  %v244_v1 = vld [vmem:[%s310_s1] sm:$0xff]   ;;  %232 = vmatprep.mubr.msk.bf16.mxu0 %vm250_vm0, %v249_v0  ;;  %v245_v2 = vld [vmem:[%s310_s1 + $0x8] sm:$0xff]   ;;  %v246_v3 = vld [vmem:[%s310_s1 + $0x10] sm:$0xff]   ;;  %vm102_vm3 = vcmask 15360   ;;  %vm196_vm4 = vcmask 261120  }
   0x2   :  { %225 = vmatpush3.bf16.msra.mxu0 %v244_v1  ;;  %v247_v4 = vld [vmem:[%s310_s1 + $0x18] sm:$0xff]   ;;  %v248_v5 = vld [vmem:[%s311_s0] sm:$0xff]  }
   0x3   :  { %226 = vmatprep.subr.bf16.mxu0 %v249_v0  ;;  %v101_v6 = vld [vmem:[%s312_s2] sm:$0x3] }
   0x4   :  { %236 = vmatprep.subr.msk.mxu1 %vm109_vm2, %v101_v6 }
   0x5   :  { %237 = vmatpush3.msk.msra.mxu1 %vm109_vm2, %v101_v6 }
   0x6   :  { %227 = vmatpush3.bf16.msra.mxu0 %v245_v2 }
   0x7   :  { %228 = vmatprep.subr.bf16.mxu0 %v249_v0 }
   0xa   :  { %229 = vmatpush3.bf16.msra.mxu0 %v246_v3 }
   0xb   :  { %230 = vmatprep.subr.bf16.mxu0 %v249_v0 }
   0xe   :  { %231 = vmatpush3.bf16.msra.mxu0 %v247_v4 }
  0x11   :  { %233 = vmatmul.mubr.msk.bf16.vlgmr.msra.gmra.mrb[0].mxu0 %vm56_vm1, %v248_v5 }
  0xe4   :  { %v94_v7 = vpop.f32.mrb[0].mxu0 }
  0xe5   :  { %190 = vrot.lane.b32.xlu0 %v94_v7, %s251_s27  ;;  %v234_v8 = vpop.f32.mrb[1].mxu0  ;;  %238 = vmatprep.mubr.msk.f32.mxu1 %vm102_vm3, %v94_v7 }
  0xe6   :  { %v97_v9 = vpop.f32.mrb[2].mxu0 }
  0xe7   :  { %v235_v10 = vpop.f32.mrb[3].mxu0  ;;  %239 = vmatmul.mubr.msk.f32.vlgmr.msra.gmra.mrb[0].mxu1 %vm102_vm3, %v97_v9 }
  0xe9   :  { %192 = vrot.lane.b32.xlu0 %v97_v9, %s251_s27 }
 0x157   :  { %v191_v11 = vpop.permute.xlu0 %190 }
 0x158   :  { %197 = vst.msk [vmem:[%s313_s4] sm:$0xff] %vm196_vm4, %v191_v11 }
 0x15b   :  { %v193_v12 = vpop.permute.xlu0 %192 }
 0x15c   :  { %198 = vst.msk [vmem:[%s313_s4 + $0x8] sm:$0xff] %vm196_vm4, %v193_v12 }
 0x1ba   :  { %v240_v13 = vpop.f32.mrb[0].mxu1 }
 0x1bb   :  { %189 = vst.msk [vmem:[%s314_s3 + $0x8] sm:$0xff] %vm56_vm1, %v240_v13  ;;  %v179_v14 = vpop.f32.mrb[1].mxu1 }
 0x1bc   :  { %188 = vst.msk [vmem:[%s314_s3] sm:$0xff] %vm56_vm1, %v179_v14 }

// kernel: videomamba_forward.29
= control target key start
LH: loop header
LB: loop body
LE: loop exit
PB: predicated region body
PF: predicated region fallthrough
CT: control target
= control target key end

     0   :  { %s820_s30 = smov 0   ;;  %s925_s0 = inlined_call_operand.vmem [shape: f32[2,5,64], index: 0, kind: input, shape index: {}]   ;;  %s926_s1 = inlined_call_operand.vmem [shape: f32[2,5,64], index: 1, kind: input, shape index: {}]   ;;  %s927_s2 = inlined_call_operand.vmem [shape: f32[1,64], index: 2, kind: input, shape index: {}]   ;;  %s928_s3 = inlined_call_operand.vmem [shape: f32[16,64], index: 3, kind: input, shape index: {}]   ;;  %s929_s4 = inlined_call_operand.vmem [shape: f32[2,5,16], index: 4, kind: input, shape index: {}]   ;;  %s930_s5 = inlined_call_operand.vmem [shape: f32[2,5,16], index: 5, kind: input, shape index: {}]   ;;  %s931_s6 = inlined_call_operand.vmem [shape: f32[1,64], index: 6, kind: input, shape index: {}]   ;;  %s932_s7 = inlined_call_operand.vmem [shape: f32[2,5,64], index: 7, kind: input, shape index: {}]   ;;  %s933_s8 = inlined_call_operand.vmem [shape: f32[16,16], index: 8, kind: input, shape index: {}]   ;;  %s934_s9 = inlined_call_operand.vmem [shape: f32[2,5,64], index: 9, kind: output, shape index: {}]  }
   0x1 LB: > { %s686_s10 = sadd.s32 4294967295, %s760_s30   ;;  %p690_p0 = scmp.ge.s32.totalorder %s760_s30, 1  ;;  %s760_s30 = sphi %s820_s30, %s19_s30  }
   0x2   : > { %p322_p1 = scmp.lt.s32.totalorder %s760_s30, 3 }
   0x4   : > { %p323_p2 = pnand %p690_p0, %p322_p1 }
   0x5   : > { %p372_p3 = scmp.lt.s32.totalorder (!%p323_p2), %s686_s10, 1  ;;  %vm419_vm0 = vcmask (!%p323_p2), 523264   ;;  %v766_v0 = vmov (!%p323_p2), 0.0   ;;  %v697_v1 = vld [vmem:[%s927_s2] ss:$0 sm:$0xff] (!%p323_p2)  ;;  %vm414_vm1 = vcmask (!%p323_p2), 520192  }
   0x6   : > { %326 = sbr.rel (%p323_p2) target bundleno = 442 (0x1ba), region = 56  ;;  %420 = vst.msk [vmem:[#allocation2] sm:$0xff] (!%p323_p2), %vm419_vm0, %v766_v0  ;;  %421 = vst.msk [vmem:[#allocation2 + $0x8] sm:$0xff] (!%p323_p2), %vm419_vm0, %v766_v0  ;;  %s866_s13 = smov (!%p323_p2), 0  }
   0xd   : > { %s936_s10 = smov (!%p372_p3, %s686_s10), 1 }
   0xe   : > { %s830_s11 = sshll.u32 %s936_s10, 3 }
   0xf   : > { %s379_s16 = scalar_lea.vmem %s926_s1, %s830_s11  ;;  %s383_s19 = scalar_lea.vmem %s929_s4, %s830_s11 }
  0x10   : > { %s387_s22 = scalar_lea.vmem %s930_s5, %s830_s11  ;;  %s391_s25 = scalar_lea.vmem %s932_s7, %s830_s11  ;;  %v396_v2 = vld [vmem:[%s379_s16] sm:$0x1f] }
  0x11   : > { %s855_s28 = scalar_lea.vmem %s934_s9, %s830_s11  ;;  %v404_v3 = vadd.f32 %v697_v1, %v396_v2  ;;  %s861_s12 = scalar_lea.vmem %s925_s0, %s830_s11 }
  0x12   : > { %v416_v12 = vld [vmem:[%s861_s12] sm:$0x1f] }
  0x13   : > { %v406_v4 = vand.u32 2147483647, %v404_v3  ;;  %v405_v9 = vmax.f32 %v404_v3, 0.0 }
  0x15   : > { %v407_v5 = vsub.f32 0.0, %v406_v4 }
  0x17   : > { %v408_v6 = vmul.f32 1.442695, %v407_v5 }
  0x19   : > { %738 = vpow2.f32 %v408_v6 }
  0x23   : > { %v739_v7 = vpop.eup %738 }
  0x24   : > { %v410_v8 = vadd.f32 1.0, %v739_v7 }
  0x26   : > { %740 = vlog2.f32 %v410_v8 }
  0x30   : > { %v741_v10 = vpop.eup %740 }
  0x31   : > { %v412_v11 = vmul.f32 0.6931472, %v741_v10 }
  0x33   : > { %v413_v13 = vadd.f32 %v412_v11, %v405_v9 }
  0x35   : > { %415 = vst.msk [vmem:[#allocation3] sm:$0x1f] %vm414_vm1, %v413_v13  ;;  %v417_v14 = vmul.f32 %v416_v12, %v413_v13 }
  0x37   : > { %418 = vst.msk [vmem:[#allocation4] sm:$0x1f] %vm414_vm1, %v417_v14 }
  0x38 LB: >> { %s872_s14 = ssub.s32 4, %s764_s13  ;;  %v445_v15 = vld [vmem:[%s933_s8] sm:$0xff]  ;;  %v446_v16 = vld [vmem:[%s933_s8 + $0x8] sm:$0xff]  ;;  %vm453_vm2 = vcmask 130048   ;;  %v767_v22 = vmov 0.0|0.0   ;;  %vm768_vm3 = vmmov 0   ;;  %s764_s13 = sphi %s866_s13, %s427_s13  }
  0x39   : >> { %s443_s23 = scalar_lea.vmem %s383_s19, %s872_s14  ;;  %715 = vmatprep.subr.bf16.mxu0 %v767_v22  ;;  %v769_v23 = vmov 0.0   ;;  %s429_s24 = scalar_lea.vmem [#allocation3], %s872_s14  ;;  %v431_v25 = vld [vmem:[%s928_s3] sm:$0xff]  ;;  %v432_v27 = vld [vmem:[%s928_s3 + $0x8] sm:$0xff]  ;;  %vm552_vm4 = vcmask 516096  }
  0x3a   : >> { %v699_v17 = vld [vmem:[%s443_s23] ss:$0 sm:$0xff]  ;;  %712 = vmatprep.mubr.msk.f32.mxu0 %vm768_vm3, %v769_v23  ;;  %s464_s15 = scalar_lea.vmem [#allocation4], %s872_s14  ;;  %v461_v37 = vld [vmem:[#allocation2 + $0x8] sm:$0xff]  ;;  %s476_s18 = scalar_lea.vmem %s387_s22, %s872_s14 }
  0x3b   : >> { %v451_v18 = vmul.f32 %v699_v17, %v445_v15  ;;  %v452_v19 = vmul.f32 %v699_v17, %v446_v16  ;;  %v460_v32 = vld [vmem:[#allocation2] sm:$0xff]  ;;  %s551_s20 = scalar_lea.vmem %s855_s28, %s872_s14  ;;  %s427_s13 = sadd.s32 1, %s764_s13  }
  0x3c   : >> { %v698_v24 = vld [vmem:[%s429_s24] ss:$0 sm:$0xff]  ;;  %p424_p4 = scmp.ge.s32.totalorder %s427_s13, 5  }
  0x3d   : >> { %v454_v20 = vsel %vm453_vm2, %v451_v18, 0.0  ;;  %v457_v21 = vsel %vm453_vm2, %v452_v19, 0.0  ;;  %v437_v26 = vmul.f32 %v698_v24, %v431_v25  ;;  %v438_v29 = vmul.f32 %v698_v24, %v432_v27  ;;  %v477_v45 = vld [vmem:[%s476_s18] sm:$0x1] }
  0x3e   : >> { %455 = vadd.xlane.f32.xlu0 %v454_v20  ;;  %v700_v33 = vld [vmem:[%s464_s15] ss:$0 sm:$0xff] }
  0x3f   : >> { %v439_v28 = vmul.f32 1.442695, %v437_v26  ;;  %v441_v30 = vmul.f32 1.442695, %v438_v29  ;;  %v554_v48 = vld [vmem:[%s391_s25] sm:$0x1f] (%p424_p4) }
  0x40   : > { %v566_v49 = vsub.f32 (%p424_p4), 0.0, %v554_v48  ;;  %v556_v53 = vld [vmem:[%s861_s12] sm:$0x1f] (%p424_p4) }
  0x41   : >> { %742 = vpow2.f32 %v439_v28  ;;  %v702_v54 = vld [vmem:[%s931_s6] ss:$0 sm:$0xff] (%p424_p4) }
  0x42   : >> { %458 = vadd.xlane.f32.xlu0 %v457_v21  ;;  %744 = vpow2.f32 %v441_v30  ;;  %v567_v50 = vmul.f32 (%p424_p4), 1.442695, %v566_v49  ;;  %v564_v55 = vmul.f32 (%p424_p4), %v702_v54, %v556_v53 }
  0x44   : > { %746 = vpow2.f32 (%p424_p4), %v567_v50 }
  0x4b   : >> { %v743_v31 = vpop.eup %742 }
  0x4c   : >> { %v462_v34 = vmul.f32 %v743_v31, %v460_v32  ;;  %v745_v35 = vpop.eup %744 }
  0x4d   : >> { %v463_v40 = vmul.f32 %v745_v35, %v461_v37 }
  0x4e   : > { %v747_v51 = vpop.eup (%p424_p4), %746 }
  0x4f   : > { %v569_v52 = vadd.f32 (%p424_p4), 1.0, %v747_v51 }
  0x51   : > { %748 = vrcp.f32 (%p424_p4), %v569_v52 }
  0x5b   : > { %v749_v58 = vpop.eup (%p424_p4), %748 }
  0x5c   : > { %v572_v59 = vmul.f32 (%p424_p4), %v749_v58, %v554_v48 }
  0xcb   : >> { %v456_v36 = vpop.xlane.xlu0 %455 }
  0xcc   : >> { %v470_v38 = vmul.f32 %v700_v33, %v456_v36 }
  0xce   : >> { %v472_v39 = vadd.f32 %v470_v38, %v462_v34 }
  0xcf   : >> { %v459_v41 = vpop.xlane.xlu0 %458 }
  0xd0   : >> { %474 = vst.msk [vmem:[#allocation2] sm:$0xff] %vm419_vm0, %v472_v39  ;;  %v471_v42 = vmul.f32 %v700_v33, %v459_v41 }
  0xd2   : >> { %v473_v43 = vadd.f32 %v471_v42, %v463_v40 }
  0xd4   : >> { %475 = vst.msk [vmem:[#allocation2 + $0x8] sm:$0xff] %vm419_vm0, %v473_v43  ;;  %v716_v44 = vpack.c.bf16 %v473_v43, %v472_v39 }
  0xd6   : >> { %717 = vmatpush3.bf16.msra.mxu0 %v716_v44 }
  0xd9   : >> { %713 = vmatmul.mubr.msk.f32.vlgmr.msra.gmra.mrb[0].mxu0 %vm453_vm2, %v477_v45 }
 0x1a7   : > { %426 = sbr.rel (!%p424_p4) target bundleno = 56 (0x38), region = 110 }
 0x1ac   : >> { %v547_v46 = vpop.f32.mrb[0].mxu0 }
 0x1ad   : >> { %553 = vst.msk [vmem:[%s551_s20] sm:$0x1] %vm552_vm4, %v547_v46  ;;  %v714_v47 = vpop.f32.mrb[1].mxu0 }
 0x1b4   : > { %v555_v56 = vld [vmem:[%s855_s28] sm:$0x1f] }
 0x1b5   : > { %v565_v57 = vadd.f32 %v564_v55, %v555_v56 }
 0x1b7   : > { %v573_v60 = vmul.f32 %v572_v59, %v565_v57 }
 0x1b9   : > { %574 = vst.msk [vmem:[%s855_s28] sm:$0x1f] %vm414_vm1, %v573_v60 }
 0x1ba PF: > { %s19_s30 = sadd.s32 1, %s760_s30  }
 0x1bb   : > { %p16_p5 = scmp.ge.s32.totalorder %s19_s30, 4  }
 0x1bd   :  { %18 = sbr.rel (!%p16_p5) target bundleno = 1 (0x1), region = 121 }

// kernel: videomamba_forward.26
= control target key start
LH: loop header
LB: loop body
LE: loop exit
PB: predicated region body
PF: predicated region fallthrough
CT: control target
= control target key end

     0   :  { %s819_s30 = smov 0   ;;  %s921_s0 = inlined_call_operand.vmem [shape: f32[2,5,64], index: 0, kind: input, shape index: {}]   ;;  %s922_s1 = inlined_call_operand.vmem [shape: f32[2,5,64], index: 1, kind: input, shape index: {}]   ;;  %s923_s2 = inlined_call_operand.vmem [shape: f32[1,64], index: 2, kind: input, shape index: {}]   ;;  %s924_s3 = inlined_call_operand.vmem [shape: f32[16,64], index: 3, kind: input, shape index: {}]   ;;  %s925_s4 = inlined_call_operand.vmem [shape: f32[2,5,16], index: 4, kind: input, shape index: {}]   ;;  %s926_s5 = inlined_call_operand.vmem [shape: f32[2,5,16], index: 5, kind: input, shape index: {}]   ;;  %s927_s6 = inlined_call_operand.vmem [shape: f32[1,64], index: 6, kind: input, shape index: {}]   ;;  %s928_s7 = inlined_call_operand.vmem [shape: f32[2,5,64], index: 7, kind: input, shape index: {}]   ;;  %s929_s8 = inlined_call_operand.vmem [shape: f32[16,16], index: 8, kind: input, shape index: {}]   ;;  %s930_s9 = inlined_call_operand.vmem [shape: f32[2,5,64], index: 9, kind: output, shape index: {}]  }
   0x1 LB: > { %s685_s10 = sadd.s32 4294967295, %s759_s30   ;;  %p689_p0 = scmp.ge.s32.totalorder %s759_s30, 1  ;;  %s759_s30 = sphi %s819_s30, %s19_s30  }
   0x2   : > { %p322_p1 = scmp.lt.s32.totalorder %s759_s30, 3 }
   0x4   : > { %p323_p2 = pnand %p689_p0, %p322_p1 }
   0x5   : > { %p372_p3 = scmp.lt.s32.totalorder (!%p323_p2), %s685_s10, 1  ;;  %vm419_vm0 = vcmask (!%p323_p2), 523264   ;;  %v765_v0 = vmov (!%p323_p2), 0.0   ;;  %v696_v1 = vld [vmem:[%s923_s2] ss:$0 sm:$0xff] (!%p323_p2)  ;;  %vm414_vm1 = vcmask (!%p323_p2), 520192  }
   0x6   : > { %326 = sbr.rel (%p323_p2) target bundleno = 441 (0x1b9), region = 56  ;;  %420 = vst.msk [vmem:[#allocation2] sm:$0xff] (!%p323_p2), %vm419_vm0, %v765_v0  ;;  %421 = vst.msk [vmem:[#allocation2 + $0x8] sm:$0xff] (!%p323_p2), %vm419_vm0, %v765_v0  ;;  %s865_s13 = smov (!%p323_p2), 0  }
   0xd   : > { %s932_s10 = smov (!%p372_p3, %s685_s10), 1 }
   0xe   : > { %s829_s11 = sshll.u32 %s932_s10, 3 }
   0xf   : > { %s379_s16 = scalar_lea.vmem %s922_s1, %s829_s11  ;;  %s383_s19 = scalar_lea.vmem %s925_s4, %s829_s11 }
  0x10   : > { %s387_s22 = scalar_lea.vmem %s926_s5, %s829_s11  ;;  %s391_s25 = scalar_lea.vmem %s928_s7, %s829_s11  ;;  %v396_v2 = vld [vmem:[%s379_s16] sm:$0x1f] }
  0x11   : > { %s854_s28 = scalar_lea.vmem %s930_s9, %s829_s11  ;;  %v404_v3 = vadd.f32 %v696_v1, %v396_v2  ;;  %s860_s12 = scalar_lea.vmem %s921_s0, %s829_s11 }
  0x12   : > { %v416_v12 = vld [vmem:[%s860_s12] sm:$0x1f] }
  0x13   : > { %v406_v4 = vand.u32 2147483647, %v404_v3  ;;  %v405_v9 = vmax.f32 %v404_v3, 0.0 }
  0x15   : > { %v407_v5 = vsub.f32 0.0, %v406_v4 }
  0x17   : > { %v408_v6 = vmul.f32 1.442695, %v407_v5 }
  0x19   : > { %737 = vpow2.f32 %v408_v6 }
  0x23   : > { %v738_v7 = vpop.eup %737 }
  0x24   : > { %v410_v8 = vadd.f32 1.0, %v738_v7 }
  0x26   : > { %739 = vlog2.f32 %v410_v8 }
  0x30   : > { %v740_v10 = vpop.eup %739 }
  0x31   : > { %v412_v11 = vmul.f32 0.6931472, %v740_v10 }
  0x33   : > { %v413_v13 = vadd.f32 %v412_v11, %v405_v9 }
  0x35   : > { %415 = vst.msk [vmem:[#allocation3] sm:$0x1f] %vm414_vm1, %v413_v13  ;;  %v417_v14 = vmul.f32 %v416_v12, %v413_v13 }
  0x37   : > { %418 = vst.msk [vmem:[#allocation4] sm:$0x1f] %vm414_vm1, %v417_v14 }
  0x38 LB: >> { %v444_v15 = vld [vmem:[%s929_s8] sm:$0xff]  ;;  %v445_v16 = vld [vmem:[%s929_s8 + $0x8] sm:$0xff]  ;;  %s442_s21 = scalar_lea.vmem %s383_s19, %s763_s13  ;;  %vm452_vm2 = vcmask 130048   ;;  %v766_v22 = vmov 0.0|0.0   ;;  %vm767_vm3 = vmmov 0   ;;  %v768_v23 = vmov 0.0   ;;  %s475_s16 = scalar_lea.vmem %s387_s22, %s763_s13  ;;  %s763_s13 = sphi %s865_s13, %s427_s13  }
  0x39   : >> { %v698_v17 = vld [vmem:[%s442_s21] ss:$0 sm:$0xff]  ;;  %714 = vmatprep.subr.bf16.mxu0 %v766_v22  ;;  %711 = vmatprep.mubr.msk.f32.mxu0 %vm767_vm3, %v768_v23  ;;  %s428_s23 = scalar_lea.vmem [#allocation3], %s763_s13  ;;  %v431_v27 = vld [vmem:[%s924_s3 + $0x8] sm:$0xff]  ;;  %s463_s10 = scalar_lea.vmem [#allocation4], %s763_s13  ;;  %vm551_vm4 = vcmask 516096  }
  0x3a   : >> { %v450_v18 = vmul.f32 %v698_v17, %v444_v15  ;;  %v451_v19 = vmul.f32 %v698_v17, %v445_v16  ;;  %v430_v25 = vld [vmem:[%s924_s3] sm:$0xff]  ;;  %v460_v37 = vld [vmem:[#allocation2 + $0x8] sm:$0xff]  ;;  %s550_s17 = scalar_lea.vmem %s854_s28, %s763_s13  ;;  %s427_s13 = sadd.s32 1, %s763_s13  }
  0x3b   : >> { %v459_v32 = vld [vmem:[#allocation2] sm:$0xff]  ;;  %p424_p4 = scmp.ge.s32.totalorder %s427_s13, 5  }
  0x3c   : >> { %v453_v20 = vsel %vm452_vm2, %v450_v18, 0.0  ;;  %v456_v21 = vsel %vm452_vm2, %v451_v19, 0.0  ;;  %v697_v24 = vld [vmem:[%s428_s23] ss:$0 sm:$0xff] }
  0x3d   : >> { %454 = vadd.xlane.f32.xlu0 %v453_v20  ;;  %v436_v26 = vmul.f32 %v697_v24, %v430_v25  ;;  %v437_v29 = vmul.f32 %v697_v24, %v431_v27  ;;  %v476_v45 = vld [vmem:[%s475_s16] sm:$0x1] }
  0x3e   : >> { %v699_v33 = vld [vmem:[%s463_s10] ss:$0 sm:$0xff] }
  0x3f   : >> { %v438_v28 = vmul.f32 1.442695, %v436_v26  ;;  %v440_v30 = vmul.f32 1.442695, %v437_v29  ;;  %v553_v48 = vld [vmem:[%s391_s25] sm:$0x1f] (%p424_p4) }
  0x40   : > { %v565_v49 = vsub.f32 (%p424_p4), 0.0, %v553_v48  ;;  %v555_v53 = vld [vmem:[%s860_s12] sm:$0x1f] (%p424_p4) }
  0x41   : >> { %457 = vadd.xlane.f32.xlu0 %v456_v21  ;;  %741 = vpow2.f32 %v438_v28  ;;  %v701_v54 = vld [vmem:[%s927_s6] ss:$0 sm:$0xff] (%p424_p4) }
  0x42   : >> { %743 = vpow2.f32 %v440_v30  ;;  %v566_v50 = vmul.f32 (%p424_p4), 1.442695, %v565_v49  ;;  %v563_v55 = vmul.f32 (%p424_p4), %v701_v54, %v555_v53 }
  0x44   : > { %745 = vpow2.f32 (%p424_p4), %v566_v50 }
  0x4b   : >> { %v742_v31 = vpop.eup %741 }
  0x4c   : >> { %v461_v34 = vmul.f32 %v742_v31, %v459_v32  ;;  %v744_v35 = vpop.eup %743 }
  0x4d   : >> { %v462_v40 = vmul.f32 %v744_v35, %v460_v37 }
  0x4e   : > { %v746_v51 = vpop.eup (%p424_p4), %745 }
  0x4f   : > { %v568_v52 = vadd.f32 (%p424_p4), 1.0, %v746_v51 }
  0x51   : > { %747 = vrcp.f32 (%p424_p4), %v568_v52 }
  0x5b   : > { %v748_v58 = vpop.eup (%p424_p4), %747 }
  0x5c   : > { %v571_v59 = vmul.f32 (%p424_p4), %v748_v58, %v553_v48 }
  0xca   : >> { %v455_v36 = vpop.xlane.xlu0 %454 }
  0xcb   : >> { %v469_v38 = vmul.f32 %v699_v33, %v455_v36 }
  0xcd   : >> { %v471_v39 = vadd.f32 %v469_v38, %v461_v34 }
  0xce   : >> { %v458_v41 = vpop.xlane.xlu0 %457 }
  0xcf   : >> { %473 = vst.msk [vmem:[#allocation2] sm:$0xff] %vm419_vm0, %v471_v39  ;;  %v470_v42 = vmul.f32 %v699_v33, %v458_v41 }
  0xd1   : >> { %v472_v43 = vadd.f32 %v470_v42, %v462_v40 }
  0xd3   : >> { %474 = vst.msk [vmem:[#allocation2 + $0x8] sm:$0xff] %vm419_vm0, %v472_v43  ;;  %v715_v44 = vpack.c.bf16 %v472_v43, %v471_v39 }
  0xd5   : >> { %716 = vmatpush3.bf16.msra.mxu0 %v715_v44 }
  0xd8   : >> { %712 = vmatmul.mubr.msk.f32.vlgmr.msra.gmra.mrb[0].mxu0 %vm452_vm2, %v476_v45 }
 0x1a6   : > { %426 = sbr.rel (!%p424_p4) target bundleno = 56 (0x38), region = 110 }
 0x1ab   : >> { %v546_v46 = vpop.f32.mrb[0].mxu0 }
 0x1ac   : >> { %552 = vst.msk [vmem:[%s550_s17] sm:$0x1] %vm551_vm4, %v546_v46  ;;  %v713_v47 = vpop.f32.mrb[1].mxu0 }
 0x1b3   : > { %v554_v56 = vld [vmem:[%s854_s28] sm:$0x1f] }
 0x1b4   : > { %v564_v57 = vadd.f32 %v563_v55, %v554_v56 }
 0x1b6   : > { %v572_v60 = vmul.f32 %v571_v59, %v564_v57 }
 0x1b8   : > { %573 = vst.msk [vmem:[%s854_s28] sm:$0x1f] %vm414_vm1, %v572_v60 }
 0x1b9 PF: > { %s19_s30 = sadd.s32 1, %s759_s30  }
 0x1ba   : > { %p16_p5 = scmp.ge.s32.totalorder %s19_s30, 4  }
 0x1bc   :  { %18 = sbr.rel (!%p16_p5) target bundleno = 1 (0x1), region = 121 }

// kernel: videomamba_forward.31
= control target key start
LH: loop header
LB: loop body
LE: loop exit
PB: predicated region body
PF: predicated region fallthrough
CT: control target
= control target key end

     0   :  { %vm22_vm0 = vcmask 261120   ;;  %s124_s0 = inlined_call_operand.vmem [shape: f32[16,32], index: 0, kind: input, shape index: {}]   ;;  %s125_s1 = inlined_call_operand.vmem [shape: f32[16,32], index: 1, kind: input, shape index: {}]   ;;  %s126_s4 = inlined_call_operand.vmem [shape: f32[16,32], index: 4, kind: output, shape index: {1}]   ;;  %s127_s2 = inlined_call_operand.vmem [shape: f32[1,32], index: 2, kind: input, shape index: {}]   ;;  %s128_s3 = inlined_call_operand.vmem [shape: f32[16,32], index: 3, kind: output, shape index: {0}]  }
   0x1   :  { %v16_v0 = vld [vmem:[%s124_s0] sm:$0xff]  ;;  %v17_v2 = vld [vmem:[%s124_s0 + $0x8] sm:$0xff] }
   0x2   :  { %v18_v1 = vld [vmem:[%s125_s1] sm:$0xff]  ;;  %v19_v4 = vld [vmem:[%s125_s1 + $0x8] sm:$0xff] }
   0x3   :  { %v20_v3 = vadd.f32 %v18_v1, %v16_v0  ;;  %v21_v5 = vadd.f32 %v19_v4, %v17_v2  ;;  %v61_v17 = vld [vmem:[%s127_s2] ss:$0 sm:$0xff] }
   0x5   :  { %v25_v6 = vmul.f32 %v20_v3, %v20_v3  ;;  %23 = vst.msk [vmem:[%s126_s4] sm:$0xff] %vm22_vm0, %v20_v3  ;;  %24 = vst.msk [vmem:[%s126_s4 + $0x8] sm:$0xff] %vm22_vm0, %v21_v5  ;;  %v26_v7 = vmul.f32 %v21_v5, %v21_v5 }
   0x7   :  { %v27_v8 = vsel %vm22_vm0, %v25_v6, 0.0  ;;  %v30_v9 = vsel %vm22_vm0, %v26_v7, 0.0 }
   0x8   :  { %28 = vadd.xlane.f32.xlu0 %v27_v8 }
   0xc   :  { %31 = vadd.xlane.f32.xlu0 %v30_v9 }
  0x95   :  { %v29_v10 = vpop.xlane.xlu0 %28 }
  0x96   :  { %v34_v11 = vmul.f32 0.03125, %v29_v10 }
  0x98   :  { %v36_v12 = vadd.f32 1e-05, %v34_v11 }
  0x99   :  { %v32_v13 = vpop.xlane.xlu0 %31 }
  0x9a   :  { %62 = vrsqrt.f32 %v36_v12  ;;  %v35_v14 = vmul.f32 0.03125, %v32_v13 }
  0x9c   :  { %v37_v15 = vadd.f32 1e-05, %v35_v14 }
  0x9e   :  { %64 = vrsqrt.f32 %v37_v15 }
  0xa4   :  { %v63_v16 = vpop.eup %62 }
  0xa5   :  { %v40_v18 = vmul.f32 %v63_v16, %v20_v3 }
  0xa7   :  { %v49_v19 = vmul.f32 %v61_v17, %v40_v18 }
  0xa8   :  { %v65_v20 = vpop.eup %64 }
  0xa9   :  { %51 = vst.msk [vmem:[%s128_s3] sm:$0xff] %vm22_vm0, %v49_v19  ;;  %v41_v21 = vmul.f32 %v65_v20, %v21_v5 }
  0xab   :  { %v50_v22 = vmul.f32 %v61_v17, %v41_v21 }
  0xad   :  { %52 = vst.msk [vmem:[%s128_s3 + $0x8] sm:$0xff] %vm22_vm0, %v50_v22 }

// kernel: videomamba_forward.40
= control target key start
LH: loop header
LB: loop body
LE: loop exit
PB: predicated region body
PF: predicated region fallthrough
CT: control target
= control target key end

     0   :  { %s173_s0 = inlined_call_operand.vmem [shape: f32[16,32], index: 0, kind: input, shape index: {}]   ;;  %s174_s1 = inlined_call_operand.vmem [shape: f32[16,32], index: 1, kind: input, shape index: {}]   ;;  %s175_s2 = inlined_call_operand.vmem [shape: f32[1,32], index: 2, kind: input, shape index: {}]   ;;  %s176_s3 = inlined_call_operand.vmem [shape: f32[16,32], index: 3, kind: output, shape index: {0}]   ;;  %s177_s4 = inlined_call_operand.hbm [shape: f32[16,32], index: 4, kind: output, shape index: {1}]  }
   0x1   :  { %v17_v0 = vld [vmem:[%s173_s0] sm:$0xff]  ;;  %v18_v2 = vld [vmem:[%s173_s0 + $0x8] sm:$0xff] }
   0x2   :  { %v19_v1 = vld [vmem:[%s174_s1] sm:$0xff]  ;;  %v20_v4 = vld [vmem:[%s174_s1 + $0x8] sm:$0xff] }
   0x3   :  { %v21_v3 = vadd.f32 %v19_v1, %v17_v0 }
   0x4   :  { %10 = vsyncpa [#allocation3], 0  ;;  %vm23_vm0 = vcmask 261120   ;;  %v22_v5 = vadd.f32 %v20_v4, %v18_v2  ;;  %s106_s0 = smov [#allocation2]  }
   0x5   :  { %v26_v6 = vmul.f32 %v21_v3, %v21_v3  ;;  %24 = vst.msk [vmem:[#allocation2] sm:$0xff] %vm23_vm0, %v21_v3  ;;  %s61_s23 = sshll.u32 %s106_s0, 4  ;;  %s62_s23 = int_to_ptr.vmem [resolvable:$true] %s61_s23 }
   0x6   :  { %v27_v7 = vmul.f32 %v22_v5, %v22_v5  ;;  %25 = vst.msk [vmem:[#allocation2 + $0x8] sm:$0xff] %vm23_vm0, %v22_v5  ;;  %s82_s24 = scalar_lea.vmem %s62_s23, 256  ;;  %p87_p1 = scmp.lt.s32.totalorder %s62_s23, %s62_s23 }
   0x7   :  { %v28_v8 = vsel %vm23_vm0, %v26_v6, 0.0  ;;  %p83_p0 = scmp.ne.s32.totalorder %s62_s23, %s82_s24  ;;  %p88_p2 = scmp.lt.s32.totalorder %s82_s24, %s82_s24 }
   0x8   :  { %29 = vadd.xlane.f32.xlu0 %v28_v8  ;;  %v31_v9 = vsel %vm23_vm0, %v27_v7, 0.0 }
   0x9   :  { %p89_p3 = por %p88_p2, %p87_p1 }
   0xb   :  { %p90_p4 = pnand %p89_p3, %p83_p0 }
   0xc   :  { %32 = vadd.xlane.f32.xlu0 %v31_v9 }
   0xd   :  { %93 = shalt.err (!%p90_p4)
}
   0xe   :  { %s94_s26 = scalar_lea.hbm %s177_s4, 256 }
   0xf   :  { %p95_p5 = scmp.ne.s32.totalorder %s177_s4, %s94_s26  ;;  %p98_p6 = scmp.lt.u32.totalorder %s94_s26, %s177_s4 }
  0x11   :  { %p100_p7 = pnand %p98_p6, %p95_p5 }
  0x13   :  { %103 = shalt.err (!%p100_p7)
}
  0x14   :  { %s107_s5 = smov 128   ;;  %s108_s6 = smov 8   ;;  %v74_v17 = vld [vmem:[%s175_s2] ss:$0 sm:$0xff] }
  0x15   :  { %67 = dma.vmem_to_hbm [thread:$0]  %s62_s23, 256, %s177_s4, [#allocation3], %s107_s5, %s107_s5, %s108_s6  }
  0x95   :  { %v30_v10 = vpop.xlane.xlu0 %29 }
  0x96   :  { %v35_v11 = vmul.f32 0.03125, %v30_v10 }
  0x98   :  { %v37_v12 = vadd.f32 1e-05, %v35_v11 }
  0x99   :  { %v33_v13 = vpop.xlane.xlu0 %32 }
  0x9a   :  { %78 = vrsqrt.f32 %v37_v12  ;;  %v36_v14 = vmul.f32 0.03125, %v33_v13 }
  0x9c   :  { %v38_v15 = vadd.f32 1e-05, %v36_v14 }
  0x9e   :  { %80 = vrsqrt.f32 %v38_v15 }
  0xa4   :  { %v79_v16 = vpop.eup %78 }
  0xa5   :  { %v41_v18 = vmul.f32 %v79_v16, %v21_v3 }
  0xa7   :  { %v50_v19 = vmul.f32 %v74_v17, %v41_v18 }
  0xa8   :  { %v81_v20 = vpop.eup %80 }
  0xa9   :  { %52 = vst.msk [vmem:[%s176_s3] sm:$0xff] %vm23_vm0, %v50_v19  ;;  %v42_v21 = vmul.f32 %v81_v20, %v22_v5 }
  0xab   :  { %v51_v22 = vmul.f32 %v74_v17, %v42_v21 }
  0xad   :  { %53 = vst.msk [vmem:[%s176_s3 + $0x8] sm:$0xff] %vm23_vm0, %v51_v22 }
  0xae   :  { %104 = dma.done.wait [#allocation3], 256  }
  0xaf   :  { %105 = vsyncadd [#allocation3], 4294967040 }
  0xb0   :  { %73 = vsyncpa [#allocation3], 1 }

// kernel: videomamba_forward.41
= control target key start
LH: loop header
LB: loop body
LE: loop exit
PB: predicated region body
PF: predicated region fallthrough
CT: control target
= control target key end

     0   :  { %v210_v0 = vmov 0.0   ;;  %vm211_vm0 = vmmov 0   ;;  %s268_s1 = inlined_call_operand.vmem [shape: bf16[128,128], index: 1, kind: input, shape index: {}]   ;;  %s269_s0 = inlined_call_operand.vmem [shape: bf16[16,128], index: 0, kind: input, shape index: {}]   ;;  %s270_s2 = inlined_call_operand.vmem [shape: f32[1,128], index: 2, kind: input, shape index: {}]   ;;  %s271_s3 = inlined_call_operand.vmem [shape: f32[16,128], index: 3, kind: output, shape index: {}]  }
   0x1   :  { %179 = vmatprep.subr.bf16.mxu0 %v210_v0  ;;  %v201_v1 = vld [vmem:[%s268_s1] sm:$0xff]   ;;  %195 = vmatprep.mubr.msk.bf16.mxu0 %vm211_vm0, %v210_v0  ;;  %v202_v2 = vld [vmem:[%s268_s1 + $0x8] sm:$0xff]   ;;  %v203_v3 = vld [vmem:[%s268_s1 + $0x10] sm:$0xff]  }
   0x2   :  { %180 = vmatpush3.bf16.msra.mxu0 %v201_v1  ;;  %v204_v4 = vld [vmem:[%s268_s1 + $0x18] sm:$0xff]   ;;  %v205_v5 = vld [vmem:[%s268_s1 + $0x20] sm:$0xff]   ;;  %v206_v6 = vld [vmem:[%s268_s1 + $0x28] sm:$0xff]  }
   0x3   :  { %181 = vmatprep.subr.bf16.mxu0 %v210_v0  ;;  %v207_v7 = vld [vmem:[%s268_s1 + $0x30] sm:$0xff]   ;;  %v208_v8 = vld [vmem:[%s268_s1 + $0x38] sm:$0xff]   ;;  %v209_v9 = vld [vmem:[%s269_s0] sm:$0xff]  }
   0x4   :  { %v169_v10 = vld [vmem:[%s270_s2] ss:$0 sm:$0xff] }
   0x6   :  { %182 = vmatpush3.bf16.msra.mxu0 %v202_v2 }
   0x7   :  { %183 = vmatprep.subr.bf16.mxu0 %v210_v0 }
   0xa   :  { %184 = vmatpush3.bf16.msra.mxu0 %v203_v3 }
   0xb   :  { %185 = vmatprep.subr.bf16.mxu0 %v210_v0 }
   0xe   :  { %186 = vmatpush3.bf16.msra.mxu0 %v204_v4 }
   0xf   :  { %187 = vmatprep.subr.bf16.mxu0 %v210_v0 }
  0x12   :  { %188 = vmatpush3.bf16.msra.mxu0 %v205_v5 }
  0x13   :  { %189 = vmatprep.subr.bf16.mxu0 %v210_v0 }
  0x16   :  { %190 = vmatpush3.bf16.msra.mxu0 %v206_v6 }
  0x17   :  { %191 = vmatprep.subr.bf16.mxu0 %v210_v0 }
  0x1a   :  { %192 = vmatpush3.bf16.msra.mxu0 %v207_v7 }
  0x1b   :  { %193 = vmatprep.subr.bf16.mxu0 %v210_v0 }
  0x1e   :  { %194 = vmatpush3.bf16.msra.mxu0 %v208_v8 }
  0x21   :  { %196 = vmatmul.mubr.bf16.vlgmr.msra.gmra.mrb[0].mxu0 %v209_v9 }
  0xf4   :  { %v129_v11 = vpop.f32.mrb[0].mxu0 }
  0xf5   :  { %v152_v12 = vadd.f32 %v169_v10, %v129_v11  ;;  %v197_v13 = vpop.f32.mrb[1].mxu0 }
  0xf6   :  { %v132_v14 = vpop.f32.mrb[2].mxu0 }
  0xf7   :  { %154 = vst [vmem:[%s271_s3] sm:$0xff] %v152_v12  ;;  %v153_v15 = vadd.f32 %v169_v10, %v132_v14  ;;  %v198_v16 = vpop.f32.mrb[3].mxu0 }
  0xf9   :  { %155 = vst [vmem:[%s271_s3 + $0x8] sm:$0xff] %v153_v15 }

</bundles_post_ra>
